<compile_context>
chip_gen: v5e
topology: v5e:2x2
jax: 0.10.0
libtpu: 0.0.40
codegen_flags: <defaults>
</compile_context>

<pallas_src>
import jax
import jax.numpy as jnp
from jax.experimental import pallas as pl
from jax.experimental.pallas import tpu as pltpu

LANE = 128
SUBLANE = 8


def _round_up(x, m):
    return ((x + m - 1) // m) * m


def _leaky_relu(x, slope=0.01):
    return jnp.where(x > 0, x, slope * x)


# --------------------------------------------------------------------------
# Kernel
# --------------------------------------------------------------------------
def make_critic_kernel(num_layers, hidden_size, seq_len, unroll):
    H = hidden_size
    G = 4 * H  # packed gate width (i|f|g|o), NOT padded to 4*128

    def kernel(x_ref, *refs):
        # refs layout:
        #   per LSTM layer: wih (Din_pad, 4H), whh (H, 4H), b (1, 4H)
        #   dense head:     w1 (H, H), b1 (1, H), w2 (H, H), b2 (1, H),
        #                   w3 (H, LANE)  [only column 0 is real]
        #   out_ref  (Bp, LANE)
        #   scratch: gate_ref (seq_len, Bp, 4H), hseq_ref (seq_len, Bp, H)
        lstm_refs = [(refs[3 * l], refs[3 * l + 1], refs[3 * l + 2])
                     for l in range(num_layers)]
        base = 3 * num_layers
        w1_ref, b1_ref, w2_ref, b2_ref, w3_ref = refs[base:base + 5]
        out_ref = refs[base + 5]
        gate_ref = refs[base + 6]
        hseq_ref = refs[base + 7]

        Bp = x_ref.shape[1]
        h_last = None

        for l in range(num_layers):
            wih_ref, whh_ref, b_ref = lstm_refs[l]

            # --- whole-sequence input projection: one big MXU matmul,
            #     bias folded in (no per-step bias broadcast). ---
            if l == 0:
                din = x_ref.shape[2]
                flat_in = x_ref[...].reshape(seq_len * Bp, din)
            else:
                flat_in = hseq_ref[...].reshape(seq_len * Bp, H)
            gate_ref[...] = (
                jnp.dot(flat_in, wih_ref[...],
                        preferred_element_type=jnp.float32)
                + b_ref[...]
            ).reshape(seq_len, Bp, G)

            # --- serial recurrence: only h @ W_hh + nonlinearities. ---
            def step(t, carry, _l=l, _whh_ref=whh_ref):
                h, c = carry
                gates = gate_ref[t] + jnp.dot(
                    h, _whh_ref[...], preferred_element_type=jnp.float32)
                if G <= LANE:
                    # Activate on the packed vector once, then lane-slice the
                    # i/f/g/o chunks (cheaper on the EUP when 4H <= 128).
                    s = jax.nn.sigmoid(gates)
                    u = jnp.tanh(gates)
                    i_g = s[:, 0:H]
                    f_g = s[:, H:2 * H]
                    g_g = u[:, 2 * H:3 * H]
                    o_g = s[:, 3 * H:4 * H]
                else:
                    i_g = jax.nn.sigmoid(gates[:, 0:H])
                    f_g = jax.nn.sigmoid(gates[:, H:2 * H])
                    g_g = jnp.tanh(gates[:, 2 * H:3 * H])
                    o_g = jax.nn.sigmoid(gates[:, 3 * H:4 * H])
                c_new = f_g * c + i_g * g_g
                h_new = o_g * jnp.tanh(c_new)
                if _l < num_layers - 1:
                    # Store this layer's hidden sequence: it is the next
                    # layer's whole-sequence matmul input.
                    hseq_ref[t] = h_new
                return h_new, c_new

            zeros = jnp.zeros((Bp, H), jnp.float32)
            h_last, _ = jax.lax.fori_loop(0, seq_len, step, (zeros, zeros),
                                          unroll=unroll)

        # --- dense head on the top layer's last hidden state. ---
        z = _leaky_relu(
            jnp.dot(h_last, w1_ref[...], preferred_element_type=jnp.float32)
            + b1_ref[...])
        z = _leaky_relu(
            jnp.dot(z, w2_ref[...], preferred_element_type=jnp.float32)
            + b2_ref[...])
        score = jnp.dot(z, w3_ref[...], preferred_element_type=jnp.float32)
        out_ref[...] = jax.nn.sigmoid(score)   # lane-dense (Bp, 128) store

    return kernel


# --------------------------------------------------------------------------
# Parameter packing (PyTorch layout -> kernel layout).  Call ONCE and reuse.
# --------------------------------------------------------------------------
def pack_params(params):
    lstm_packed = []
    for (w_ih, w_hh, b_ih, b_hh) in params["lstm"]:
        four_h, in_dim = w_ih.shape
        d_pad = _round_up(in_dim, SUBLANE)
        wih = jnp.zeros((d_pad, four_h), jnp.float32)
        wih = wih.at[:in_dim, :].set(jnp.asarray(w_ih, jnp.float32).T)
        whh = jnp.asarray(w_hh, jnp.float32).T                    # (H, 4H)
        b = jnp.asarray(b_ih + b_hh, jnp.float32)[None, :]        # (1, 4H)
        lstm_packed.append((wih, whh, b))

    w1, b1, w2, b2, w3 = params["dense"]
    H = w1.shape[0]
    w3p = jnp.zeros((H, LANE), jnp.float32)
    w3p = w3p.at[:, 0].set(jnp.asarray(w3[0, :], jnp.float32))
    dense_packed = (
        jnp.asarray(w1, jnp.float32).T,
        jnp.asarray(b1, jnp.float32)[None, :],
        jnp.asarray(w2, jnp.float32).T,
        jnp.asarray(b2, jnp.float32)[None, :],
        w3p,
    )
    return {"lstm": lstm_packed, "dense": dense_packed}


# --------------------------------------------------------------------------
# Wrapper (jitted; shapes are static under jit)
# --------------------------------------------------------------------------
@jax.jit
def critic_forward(x, packed):
    """x: (seq_len, batch, input_size) float32 -> (batch, 1) float32."""
    seq_len, batch, in_size = x.shape
    lstm = packed["lstm"]
    dense = packed["dense"]
    num_layers = len(lstm)
    H = lstm[0][1].shape[0]        # whh: (H, 4H)
    G = 4 * H
    d0p = lstm[0][0].shape[0]      # padded layer-0 input width
    Bp = _round_up(batch, SUBLANE)

    x_pad = jnp.zeros((seq_len, Bp, d0p), jnp.float32)
    x_pad = x_pad.at[:, :batch, :in_size].set(x.astype(jnp.float32))

    flat_inputs = [x_pad]
    for (wih, whh, b) in lstm:
        flat_inputs.extend([wih, whh, b])
    flat_inputs.extend(dense)

    unroll = True if seq_len <= 32 else 4
    kernel = make_critic_kernel(num_layers, H, seq_len, unroll)

    scratch_shapes = [
        pltpu.VMEM((seq_len, Bp, G), jnp.float32),   # precomputed gate slab
        pltpu.VMEM((seq_len, Bp, H), jnp.float32),   # per-layer hidden sequence
    ]

    # Everything is whole-array VMEM resident (no grid pipelining): size the
    # scoped VMEM limit from the real footprint instead of the 16/32 MiB
    # default, with headroom.
    footprint = 4 * (x_pad.size + Bp * LANE
                     + seq_len * Bp * G + seq_len * Bp * H
                     + sum(int(a.size) for a in flat_inputs[1:]))
    vmem_limit = int(min(128 * 1024 * 1024,
                         max(32 * 1024 * 1024, 2 * footprint + (8 << 20))))

    vmem_spec = pl.BlockSpec(memory_space=pltpu.MemorySpace.VMEM)
    out_pad = pl.pallas_call(
        kernel,
        out_shape=jax.ShapeDtypeStruct((Bp, LANE), jnp.float32),
        in_specs=[vmem_spec] * len(flat_inputs),
        out_specs=vmem_spec,
        scratch_shapes=scratch_shapes,
        compiler_params=pltpu.CompilerParams(vmem_limit_bytes=vmem_limit),
    )(*flat_inputs)

    return out_pad[:batch, :1]


# --------------------------------------------------------------------------
# PyTorch-style params + pure-JAX reference
# --------------------------------------------------------------------------
def init_params(key, input_size, hidden_size, num_layers):
    H = hidden_size
    bound = 1.0 / (H ** 0.5)
    lstm = []
    for l in range(num_layers):
        in_dim = input_size if l == 0 else H
        key, k1, k2, k3, k4 = jax.random.split(key, 5)
        w_ih = jax.random.uniform(k1, (4 * H, in_dim), jnp.float32, -bound, bound)
        w_hh = jax.random.uniform(k2, (4 * H, H), jnp.float32, -bound, bound)
        b_ih = jax.random.uniform(k3, (4 * H,), jnp.float32, -bound, bound)
        b_hh = jax.random.uniform(k4, (4 * H,), jnp.float32, -bound, bound)
        lstm.append((w_ih, w_hh, b_ih, b_hh))
    key, k1, k2, k3, k4, k5 = jax.random.split(key, 6)
    w1 = jax.random.uniform(k1, (H, H), jnp.float32, -bound, bound)
    b1 = jax.random.uniform(k2, (H,), jnp.float32, -bound, bound)
    w2 = jax.random.uniform(k3, (H, H), jnp.float32, -bound, bound)
    b2 = jax.random.uniform(k4, (H,), jnp.float32, -bound, bound)
    w3 = jax.random.uniform(k5, (1, H), jnp.float32, -bound, bound)
    return {"lstm": lstm, "dense": (w1, b1, w2, b2, w3)}


def critic_ref(x, params):
    """Pure-JAX reference mirroring torch semantics (batch_first=False LSTM)."""
    lstm = params["lstm"]
    num_layers = len(lstm)
    H = lstm[0][1].shape[1]
    seq_len, batch, _ = x.shape
    h = [jnp.zeros((batch, H), jnp.float32) for _ in range(num_layers)]
    c = [jnp.zeros((batch, H), jnp.float32) for _ in range(num_layers)]
    for t in range(seq_len):
        inp = x[t]
        for l, (w_ih, w_hh, b_ih, b_hh) in enumerate(lstm):
            gates = inp @ w_ih.T + h[l] @ w_hh.T + b_ih + b_hh
            i_g = jax.nn.sigmoid(gates[:, :H])
            f_g = jax.nn.sigmoid(gates[:, H:2 * H])
            g_g = jnp.tanh(gates[:, 2 * H:3 * H])
            o_g = jax.nn.sigmoid(gates[:, 3 * H:])
            c[l] = f_g * c[l] + i_g * g_g
            h[l] = o_g * jnp.tanh(c[l])
            inp = h[l]
    w1, b1, w2, b2, w3 = params["dense"]
    z = _leaky_relu(h[-1] @ w1.T + b1)
    z = _leaky_relu(z @ w2.T + b2)
    return jax.nn.sigmoid(z @ w3.T)


if __name__ == "__main__":
    input_size = 8
    hidden_size = 32
    num_layers = 2
    seq_len = 8
    batch = 2

    key = jax.random.PRNGKey(0)
    kp, kx = jax.random.split(key)
    params = init_params(kp, input_size, hidden_size, num_layers)
    x = jax.random.normal(kx, (seq_len, batch, input_size), jnp.float32)

    packed = pack_params(params)      # pack once, reuse (per review)
    out = critic_forward(x, packed)
    out = jax.block_until_ready(out)

    ref = critic_ref(x, params)
    assert out.shape == (batch, 1)
    assert jnp.allclose(out, ref, atol=1e-5, rtol=1e-5), (out, ref)

    print("KERNEL_OK")
</pallas_src>

<mosaic_0001>
module attributes {stable_mosaic.version = 11 : i64} {
  func.func @kernel(%arg0: memref<8x8x8xf32, #tpu.memory_space<vmem>>, %arg1: memref<8x128xf32, #tpu.memory_space<vmem>>, %arg2: memref<32x128xf32, #tpu.memory_space<vmem>>, %arg3: memref<1x128xf32, #tpu.memory_space<vmem>>, %arg4: memref<32x128xf32, #tpu.memory_space<vmem>>, %arg5: memref<32x128xf32, #tpu.memory_space<vmem>>, %arg6: memref<1x128xf32, #tpu.memory_space<vmem>>, %arg7: memref<32x32xf32, #tpu.memory_space<vmem>>, %arg8: memref<1x32xf32, #tpu.memory_space<vmem>>, %arg9: memref<32x32xf32, #tpu.memory_space<vmem>>, %arg10: memref<1x32xf32, #tpu.memory_space<vmem>>, %arg11: memref<32x128xf32, #tpu.memory_space<vmem>>, %arg12: memref<8x128xf32, #tpu.memory_space<vmem>>, %arg13: memref<8x8x128xf32, #tpu.memory_space<vmem>>, %arg14: memref<8x8x32xf32, #tpu.memory_space<vmem>>) attributes {dimension_semantics = [], scalar_prefetch = 0 : i64, scratch_operands = 2 : i64, tpu.core_type = #tpu.core_type<tc>} {
    %c0 = arith.constant 0 : index
    %c0_0 = arith.constant 0 : index
    %c0_1 = arith.constant 0 : index
    %0 = vector.load %arg0[%c0, %c0_0, %c0_1] : memref<8x8x8xf32, #tpu.memory_space<vmem>>, vector<8x8x8xf32>
    %1 = vector.shape_cast %0 : vector<8x8x8xf32> to vector<64x8xf32>
    %c0_2 = arith.constant 0 : index
    %c0_3 = arith.constant 0 : index
    %2 = vector.load %arg1[%c0_2, %c0_3] : memref<8x128xf32, #tpu.memory_space<vmem>>, vector<8x128xf32>
    %cst = arith.constant dense<0.000000e+00> : vector<64x128xf32>
    %3 = tpu.matmul %1, %2, %cst {dimension_numbers = #tpu.dot_dimension_numbers<[1], [0], [0], [1], [0, 0, 1, 1], [], []>} : vector<64x8xf32>, vector<8x128xf32>, vector<64x128xf32> -> vector<64x128xf32>
    %c0_4 = arith.constant 0 : index
    %c0_5 = arith.constant 0 : index
    %4 = vector.load %arg3[%c0_4, %c0_5] : memref<1x128xf32, #tpu.memory_space<vmem>>, vector<1x128xf32>
    %5 = vector.broadcast %4 : vector<1x128xf32> to vector<64x128xf32>
    %6 = arith.addf %3, %5 : vector<64x128xf32>
    %7 = vector.shape_cast %6 : vector<64x128xf32> to vector<8x8x128xf32>
    %c0_6 = arith.constant 0 : index
    %c0_7 = arith.constant 0 : index
    %c0_8 = arith.constant 0 : index
    %8 = vector.load %arg13[%c0_6, %c0_7, %c0_8] : memref<8x8x128xf32, #tpu.memory_space<vmem>>, vector<8x8x128xf32>
    tpu.vector_store %arg13[%c0_6, %c0_7, %c0_8], %7 {strides = array<i32>} : memref<8x8x128xf32, #tpu.memory_space<vmem>>, vector<8x8x128xf32>,
    %cst_9 = arith.constant 0.000000e+00 : f32
    %9 = vector.broadcast %cst_9 : f32 to vector<8x32xf32>
    %c0_i32 = arith.constant 0 : i32
    %10 = arith.index_cast %c0_i32 : i32 to index
    %c0_10 = arith.constant 0 : index
    %c0_11 = arith.constant 0 : index
    %11 = vector.load %arg13[%10, %c0_10, %c0_11] : memref<8x8x128xf32, #tpu.memory_space<vmem>>, vector<1x8x128xf32>
    %12 = vector.shape_cast %11 : vector<1x8x128xf32> to vector<8x128xf32>
    %c0_12 = arith.constant 0 : index
    %c0_13 = arith.constant 0 : index
    %13 = vector.load %arg2[%c0_12, %c0_13] : memref<32x128xf32, #tpu.memory_space<vmem>>, vector<32x128xf32>
    %cst_14 = arith.constant dense<0.000000e+00> : vector<8x128xf32>
    %14 = tpu.matmul %9, %13, %cst_14 {dimension_numbers = #tpu.dot_dimension_numbers<[1], [0], [0], [1], [0, 0, 1, 1], [], []>} : vector<8x32xf32>, vector<32x128xf32>, vector<8x128xf32> -> vector<8x128xf32>
    %15 = arith.addf %12, %14 : vector<8x128xf32>
    %16 = arith.negf %15 : vector<8x128xf32>
    %17 = math.exp %16 : vector<8x128xf32>
    %cst_15 = arith.constant 1.000000e+00 : f32
    %18 = vector.broadcast %cst_15 : f32 to vector<8x128xf32>
    %19 = arith.addf %18, %17 : vector<8x128xf32>
    %20 = arith.divf %18, %19 : vector<8x128xf32>
    %21 = math.tanh %15 : vector<8x128xf32>
    %22 = vector.extract_strided_slice %20 {offsets = [0, 0], sizes = [8, 32], strides = [1, 1]} : vector<8x128xf32> to vector<8x32xf32>
    %23 = vector.extract_strided_slice %20 {offsets = [0, 32], sizes = [8, 32], strides = [1, 1]} : vector<8x128xf32> to vector<8x32xf32>
    %24 = vector.extract_strided_slice %21 {offsets = [0, 64], sizes = [8, 32], strides = [1, 1]} : vector<8x128xf32> to vector<8x32xf32>
    %25 = vector.extract_strided_slice %20 {offsets = [0, 96], sizes = [8, 32], strides = [1, 1]} : vector<8x128xf32> to vector<8x32xf32>
    %26 = arith.mulf %23, %9 : vector<8x32xf32>
    %27 = arith.mulf %22, %24 : vector<8x32xf32>
    %28 = arith.addf %26, %27 : vector<8x32xf32>
    %29 = math.tanh %28 : vector<8x32xf32>
    %30 = arith.mulf %25, %29 : vector<8x32xf32>
    %31 = arith.index_cast %c0_i32 : i32 to index
    %c0_16 = arith.constant 0 : index
    %c0_17 = arith.constant 0 : index
    %32 = vector.load %arg14[%31, %c0_16, %c0_17] : memref<8x8x32xf32, #tpu.memory_space<vmem>>, vector<1x8x32xf32>
    %33 = vector.shape_cast %32 : vector<1x8x32xf32> to vector<8x32xf32>
    %34 = vector.shape_cast %30 : vector<8x32xf32> to vector<1x8x32xf32>
    tpu.vector_store %arg14[%31, %c0_16, %c0_17], %34 {strides = array<i32>} : memref<8x8x32xf32, #tpu.memory_space<vmem>>, vector<1x8x32xf32>,
    %c1_i32 = arith.constant 1 : i32
    %35 = arith.index_cast %c1_i32 : i32 to index
    %c0_18 = arith.constant 0 : index
    %c0_19 = arith.constant 0 : index
    %36 = vector.load %arg13[%35, %c0_18, %c0_19] : memref<8x8x128xf32, #tpu.memory_space<vmem>>, vector<1x8x128xf32>
    %37 = vector.shape_cast %36 : vector<1x8x128xf32> to vector<8x128xf32>
    %c0_20 = arith.constant 0 : index
    %c0_21 = arith.constant 0 : index
    %38 = vector.load %arg2[%c0_20, %c0_21] : memref<32x128xf32, #tpu.memory_space<vmem>>, vector<32x128xf32>
    %cst_22 = arith.constant dense<0.000000e+00> : vector<8x128xf32>
    %39 = tpu.matmul %30, %38, %cst_22 {dimension_numbers = #tpu.dot_dimension_numbers<[1], [0], [0], [1], [0, 0, 1, 1], [], []>} : vector<8x32xf32>, vector<32x128xf32>, vector<8x128xf32> -> vector<8x128xf32>
    %40 = arith.addf %37, %39 : vector<8x128xf32>
    %41 = arith.negf %40 : vector<8x128xf32>
    %42 = math.exp %41 : vector<8x128xf32>
    %cst_23 = arith.constant 1.000000e+00 : f32
    %43 = vector.broadcast %cst_23 : f32 to vector<8x128xf32>
    %44 = arith.addf %43, %42 : vector<8x128xf32>
    %45 = arith.divf %43, %44 : vector<8x128xf32>
    %46 = math.tanh %40 : vector<8x128xf32>
    %47 = vector.extract_strided_slice %45 {offsets = [0, 0], sizes = [8, 32], strides = [1, 1]} : vector<8x128xf32> to vector<8x32xf32>
    %48 = vector.extract_strided_slice %45 {offsets = [0, 32], sizes = [8, 32], strides = [1, 1]} : vector<8x128xf32> to vector<8x32xf32>
    %49 = vector.extract_strided_slice %46 {offsets = [0, 64], sizes = [8, 32], strides = [1, 1]} : vector<8x128xf32> to vector<8x32xf32>
    %50 = vector.extract_strided_slice %45 {offsets = [0, 96], sizes = [8, 32], strides = [1, 1]} : vector<8x128xf32> to vector<8x32xf32>
    %51 = arith.mulf %48, %28 : vector<8x32xf32>
    %52 = arith.mulf %47, %49 : vector<8x32xf32>
    %53 = arith.addf %51, %52 : vector<8x32xf32>
    %54 = math.tanh %53 : vector<8x32xf32>
    %55 = arith.mulf %50, %54 : vector<8x32xf32>
    %56 = arith.index_cast %c1_i32 : i32 to index
    %c0_24 = arith.constant 0 : index
    %c0_25 = arith.constant 0 : index
    %57 = vector.load %arg14[%56, %c0_24, %c0_25] : memref<8x8x32xf32, #tpu.memory_space<vmem>>, vector<1x8x32xf32>
    %58 = vector.shape_cast %57 : vector<1x8x32xf32> to vector<8x32xf32>
    %59 = vector.shape_cast %55 : vector<8x32xf32> to vector<1x8x32xf32>
    tpu.vector_store %arg14[%56, %c0_24, %c0_25], %59 {strides = array<i32>} : memref<8x8x32xf32, #tpu.memory_space<vmem>>, vector<1x8x32xf32>,
    %c2_i32 = arith.constant 2 : i32
    %60 = arith.index_cast %c2_i32 : i32 to index
    %c0_26 = arith.constant 0 : index
    %c0_27 = arith.constant 0 : index
    %61 = vector.load %arg13[%60, %c0_26, %c0_27] : memref<8x8x128xf32, #tpu.memory_space<vmem>>, vector<1x8x128xf32>
    %62 = vector.shape_cast %61 : vector<1x8x128xf32> to vector<8x128xf32>
    %c0_28 = arith.constant 0 : index
    %c0_29 = arith.constant 0 : index
    %63 = vector.load %arg2[%c0_28, %c0_29] : memref<32x128xf32, #tpu.memory_space<vmem>>, vector<32x128xf32>
    %cst_30 = arith.constant dense<0.000000e+00> : vector<8x128xf32>
    %64 = tpu.matmul %55, %63, %cst_30 {dimension_numbers = #tpu.dot_dimension_numbers<[1], [0], [0], [1], [0, 0, 1, 1], [], []>} : vector<8x32xf32>, vector<32x128xf32>, vector<8x128xf32> -> vector<8x128xf32>
    %65 = arith.addf %62, %64 : vector<8x128xf32>
    %66 = arith.negf %65 : vector<8x128xf32>
    %67 = math.exp %66 : vector<8x128xf32>
    %cst_31 = arith.constant 1.000000e+00 : f32
    %68 = vector.broadcast %cst_31 : f32 to vector<8x128xf32>
    %69 = arith.addf %68, %67 : vector<8x128xf32>
    %70 = arith.divf %68, %69 : vector<8x128xf32>
    %71 = math.tanh %65 : vector<8x128xf32>
    %72 = vector.extract_strided_slice %70 {offsets = [0, 0], sizes = [8, 32], strides = [1, 1]} : vector<8x128xf32> to vector<8x32xf32>
    %73 = vector.extract_strided_slice %70 {offsets = [0, 32], sizes = [8, 32], strides = [1, 1]} : vector<8x128xf32> to vector<8x32xf32>
    %74 = vector.extract_strided_slice %71 {offsets = [0, 64], sizes = [8, 32], strides = [1, 1]} : vector<8x128xf32> to vector<8x32xf32>
    %75 = vector.extract_strided_slice %70 {offsets = [0, 96], sizes = [8, 32], strides = [1, 1]} : vector<8x128xf32> to vector<8x32xf32>
    %76 = arith.mulf %73, %53 : vector<8x32xf32>
    %77 = arith.mulf %72, %74 : vector<8x32xf32>
    %78 = arith.addf %76, %77 : vector<8x32xf32>
    %79 = math.tanh %78 : vector<8x32xf32>
    %80 = arith.mulf %75, %79 : vector<8x32xf32>
    %81 = arith.index_cast %c2_i32 : i32 to index
    %c0_32 = arith.constant 0 : index
    %c0_33 = arith.constant 0 : index
    %82 = vector.load %arg14[%81, %c0_32, %c0_33] : memref<8x8x32xf32, #tpu.memory_space<vmem>>, vector<1x8x32xf32>
    %83 = vector.shape_cast %82 : vector<1x8x32xf32> to vector<8x32xf32>
    %84 = vector.shape_cast %80 : vector<8x32xf32> to vector<1x8x32xf32>
    tpu.vector_store %arg14[%81, %c0_32, %c0_33], %84 {strides = array<i32>} : memref<8x8x32xf32, #tpu.memory_space<vmem>>, vector<1x8x32xf32>,
    %c3_i32 = arith.constant 3 : i32
    %85 = arith.index_cast %c3_i32 : i32 to index
    %c0_34 = arith.constant 0 : index
    %c0_35 = arith.constant 0 : index
    %86 = vector.load %arg13[%85, %c0_34, %c0_35] : memref<8x8x128xf32, #tpu.memory_space<vmem>>, vector<1x8x128xf32>
    %87 = vector.shape_cast %86 : vector<1x8x128xf32> to vector<8x128xf32>
    %c0_36 = arith.constant 0 : index
    %c0_37 = arith.constant 0 : index
    %88 = vector.load %arg2[%c0_36, %c0_37] : memref<32x128xf32, #tpu.memory_space<vmem>>, vector<32x128xf32>
    %cst_38 = arith.constant dense<0.000000e+00> : vector<8x128xf32>
    %89 = tpu.matmul %80, %88, %cst_38 {dimension_numbers = #tpu.dot_dimension_numbers<[1], [0], [0], [1], [0, 0, 1, 1], [], []>} : vector<8x32xf32>, vector<32x128xf32>, vector<8x128xf32> -> vector<8x128xf32>
    %90 = arith.addf %87, %89 : vector<8x128xf32>
    %91 = arith.negf %90 : vector<8x128xf32>
    %92 = math.exp %91 : vector<8x128xf32>
    %cst_39 = arith.constant 1.000000e+00 : f32
    %93 = vector.broadcast %cst_39 : f32 to vector<8x128xf32>
    %94 = arith.addf %93, %92 : vector<8x128xf32>
    %95 = arith.divf %93, %94 : vector<8x128xf32>
    %96 = math.tanh %90 : vector<8x128xf32>
    %97 = vector.extract_strided_slice %95 {offsets = [0, 0], sizes = [8, 32], strides = [1, 1]} : vector<8x128xf32> to vector<8x32xf32>
    %98 = vector.extract_strided_slice %95 {offsets = [0, 32], sizes = [8, 32], strides = [1, 1]} : vector<8x128xf32> to vector<8x32xf32>
    %99 = vector.extract_strided_slice %96 {offsets = [0, 64], sizes = [8, 32], strides = [1, 1]} : vector<8x128xf32> to vector<8x32xf32>
    %100 = vector.extract_strided_slice %95 {offsets = [0, 96], sizes = [8, 32], strides = [1, 1]} : vector<8x128xf32> to vector<8x32xf32>
    %101 = arith.mulf %98, %78 : vector<8x32xf32>
    %102 = arith.mulf %97, %99 : vector<8x32xf32>
    %103 = arith.addf %101, %102 : vector<8x32xf32>
    %104 = math.tanh %103 : vector<8x32xf32>
    %105 = arith.mulf %100, %104 : vector<8x32xf32>
    %106 = arith.index_cast %c3_i32 : i32 to index
    %c0_40 = arith.constant 0 : index
    %c0_41 = arith.constant 0 : index
    %107 = vector.load %arg14[%106, %c0_40, %c0_41] : memref<8x8x32xf32, #tpu.memory_space<vmem>>, vector<1x8x32xf32>
    %108 = vector.shape_cast %107 : vector<1x8x32xf32> to vector<8x32xf32>
    %109 = vector.shape_cast %105 : vector<8x32xf32> to vector<1x8x32xf32>
    tpu.vector_store %arg14[%106, %c0_40, %c0_41], %109 {strides = array<i32>} : memref<8x8x32xf32, #tpu.memory_space<vmem>>, vector<1x8x32xf32>,
    %c4_i32 = arith.constant 4 : i32
    %110 = arith.index_cast %c4_i32 : i32 to index
    %c0_42 = arith.constant 0 : index
    %c0_43 = arith.constant 0 : index
    %111 = vector.load %arg13[%110, %c0_42, %c0_43] : memref<8x8x128xf32, #tpu.memory_space<vmem>>, vector<1x8x128xf32>
    %112 = vector.shape_cast %111 : vector<1x8x128xf32> to vector<8x128xf32>
    %c0_44 = arith.constant 0 : index
    %c0_45 = arith.constant 0 : index
    %113 = vector.load %arg2[%c0_44, %c0_45] : memref<32x128xf32, #tpu.memory_space<vmem>>, vector<32x128xf32>
    %cst_46 = arith.constant dense<0.000000e+00> : vector<8x128xf32>
    %114 = tpu.matmul %105, %113, %cst_46 {dimension_numbers = #tpu.dot_dimension_numbers<[1], [0], [0], [1], [0, 0, 1, 1], [], []>} : vector<8x32xf32>, vector<32x128xf32>, vector<8x128xf32> -> vector<8x128xf32>
    %115 = arith.addf %112, %114 : vector<8x128xf32>
    %116 = arith.negf %115 : vector<8x128xf32>
    %117 = math.exp %116 : vector<8x128xf32>
    %cst_47 = arith.constant 1.000000e+00 : f32
    %118 = vector.broadcast %cst_47 : f32 to vector<8x128xf32>
    %119 = arith.addf %118, %117 : vector<8x128xf32>
    %120 = arith.divf %118, %119 : vector<8x128xf32>
    %121 = math.tanh %115 : vector<8x128xf32>
    %122 = vector.extract_strided_slice %120 {offsets = [0, 0], sizes = [8, 32], strides = [1, 1]} : vector<8x128xf32> to vector<8x32xf32>
    %123 = vector.extract_strided_slice %120 {offsets = [0, 32], sizes = [8, 32], strides = [1, 1]} : vector<8x128xf32> to vector<8x32xf32>
    %124 = vector.extract_strided_slice %121 {offsets = [0, 64], sizes = [8, 32], strides = [1, 1]} : vector<8x128xf32> to vector<8x32xf32>
    %125 = vector.extract_strided_slice %120 {offsets = [0, 96], sizes = [8, 32], strides = [1, 1]} : vector<8x128xf32> to vector<8x32xf32>
    %126 = arith.mulf %123, %103 : vector<8x32xf32>
    %127 = arith.mulf %122, %124 : vector<8x32xf32>
    %128 = arith.addf %126, %127 : vector<8x32xf32>
    %129 = math.tanh %128 : vector<8x32xf32>
    %130 = arith.mulf %125, %129 : vector<8x32xf32>
    %131 = arith.index_cast %c4_i32 : i32 to index
    %c0_48 = arith.constant 0 : index
    %c0_49 = arith.constant 0 : index
    %132 = vector.load %arg14[%131, %c0_48, %c0_49] : memref<8x8x32xf32, #tpu.memory_space<vmem>>, vector<1x8x32xf32>
    %133 = vector.shape_cast %132 : vector<1x8x32xf32> to vector<8x32xf32>
    %134 = vector.shape_cast %130 : vector<8x32xf32> to vector<1x8x32xf32>
    tpu.vector_store %arg14[%131, %c0_48, %c0_49], %134 {strides = array<i32>} : memref<8x8x32xf32, #tpu.memory_space<vmem>>, vector<1x8x32xf32>,
    %c5_i32 = arith.constant 5 : i32
    %135 = arith.index_cast %c5_i32 : i32 to index
    %c0_50 = arith.constant 0 : index
    %c0_51 = arith.constant 0 : index
    %136 = vector.load %arg13[%135, %c0_50, %c0_51] : memref<8x8x128xf32, #tpu.memory_space<vmem>>, vector<1x8x128xf32>
    %137 = vector.shape_cast %136 : vector<1x8x128xf32> to vector<8x128xf32>
    %c0_52 = arith.constant 0 : index
    %c0_53 = arith.constant 0 : index
    %138 = vector.load %arg2[%c0_52, %c0_53] : memref<32x128xf32, #tpu.memory_space<vmem>>, vector<32x128xf32>
    %cst_54 = arith.constant dense<0.000000e+00> : vector<8x128xf32>
    %139 = tpu.matmul %130, %138, %cst_54 {dimension_numbers = #tpu.dot_dimension_numbers<[1], [0], [0], [1], [0, 0, 1, 1], [], []>} : vector<8x32xf32>, vector<32x128xf32>, vector<8x128xf32> -> vector<8x128xf32>
    %140 = arith.addf %137, %139 : vector<8x128xf32>
    %141 = arith.negf %140 : vector<8x128xf32>
    %142 = math.exp %141 : vector<8x128xf32>
    %cst_55 = arith.constant 1.000000e+00 : f32
    %143 = vector.broadcast %cst_55 : f32 to vector<8x128xf32>
    %144 = arith.addf %143, %142 : vector<8x128xf32>
    %145 = arith.divf %143, %144 : vector<8x128xf32>
    %146 = math.tanh %140 : vector<8x128xf32>
    %147 = vector.extract_strided_slice %145 {offsets = [0, 0], sizes = [8, 32], strides = [1, 1]} : vector<8x128xf32> to vector<8x32xf32>
    %148 = vector.extract_strided_slice %145 {offsets = [0, 32], sizes = [8, 32], strides = [1, 1]} : vector<8x128xf32> to vector<8x32xf32>
    %149 = vector.extract_strided_slice %146 {offsets = [0, 64], sizes = [8, 32], strides = [1, 1]} : vector<8x128xf32> to vector<8x32xf32>
    %150 = vector.extract_strided_slice %145 {offsets = [0, 96], sizes = [8, 32], strides = [1, 1]} : vector<8x128xf32> to vector<8x32xf32>
    %151 = arith.mulf %148, %128 : vector<8x32xf32>
    %152 = arith.mulf %147, %149 : vector<8x32xf32>
    %153 = arith.addf %151, %152 : vector<8x32xf32>
    %154 = math.tanh %153 : vector<8x32xf32>
    %155 = arith.mulf %150, %154 : vector<8x32xf32>
    %156 = arith.index_cast %c5_i32 : i32 to index
    %c0_56 = arith.constant 0 : index
    %c0_57 = arith.constant 0 : index
    %157 = vector.load %arg14[%156, %c0_56, %c0_57] : memref<8x8x32xf32, #tpu.memory_space<vmem>>, vector<1x8x32xf32>
    %158 = vector.shape_cast %157 : vector<1x8x32xf32> to vector<8x32xf32>
    %159 = vector.shape_cast %155 : vector<8x32xf32> to vector<1x8x32xf32>
    tpu.vector_store %arg14[%156, %c0_56, %c0_57], %159 {strides = array<i32>} : memref<8x8x32xf32, #tpu.memory_space<vmem>>, vector<1x8x32xf32>,
    %c6_i32 = arith.constant 6 : i32
    %160 = arith.index_cast %c6_i32 : i32 to index
    %c0_58 = arith.constant 0 : index
    %c0_59 = arith.constant 0 : index
    %161 = vector.load %arg13[%160, %c0_58, %c0_59] : memref<8x8x128xf32, #tpu.memory_space<vmem>>, vector<1x8x128xf32>
    %162 = vector.shape_cast %161 : vector<1x8x128xf32> to vector<8x128xf32>
    %c0_60 = arith.constant 0 : index
    %c0_61 = arith.constant 0 : index
    %163 = vector.load %arg2[%c0_60, %c0_61] : memref<32x128xf32, #tpu.memory_space<vmem>>, vector<32x128xf32>
    %cst_62 = arith.constant dense<0.000000e+00> : vector<8x128xf32>
    %164 = tpu.matmul %155, %163, %cst_62 {dimension_numbers = #tpu.dot_dimension_numbers<[1], [0], [0], [1], [0, 0, 1, 1], [], []>} : vector<8x32xf32>, vector<32x128xf32>, vector<8x128xf32> -> vector<8x128xf32>
    %165 = arith.addf %162, %164 : vector<8x128xf32>
    %166 = arith.negf %165 : vector<8x128xf32>
    %167 = math.exp %166 : vector<8x128xf32>
    %cst_63 = arith.constant 1.000000e+00 : f32
    %168 = vector.broadcast %cst_63 : f32 to vector<8x128xf32>
    %169 = arith.addf %168, %167 : vector<8x128xf32>
    %170 = arith.divf %168, %169 : vector<8x128xf32>
    %171 = math.tanh %165 : vector<8x128xf32>
    %172 = vector.extract_strided_slice %170 {offsets = [0, 0], sizes = [8, 32], strides = [1, 1]} : vector<8x128xf32> to vector<8x32xf32>
    %173 = vector.extract_strided_slice %170 {offsets = [0, 32], sizes = [8, 32], strides = [1, 1]} : vector<8x128xf32> to vector<8x32xf32>
    %174 = vector.extract_strided_slice %171 {offsets = [0, 64], sizes = [8, 32], strides = [1, 1]} : vector<8x128xf32> to vector<8x32xf32>
    %175 = vector.extract_strided_slice %170 {offsets = [0, 96], sizes = [8, 32], strides = [1, 1]} : vector<8x128xf32> to vector<8x32xf32>
    %176 = arith.mulf %173, %153 : vector<8x32xf32>
    %177 = arith.mulf %172, %174 : vector<8x32xf32>
    %178 = arith.addf %176, %177 : vector<8x32xf32>
    %179 = math.tanh %178 : vector<8x32xf32>
    %180 = arith.mulf %175, %179 : vector<8x32xf32>
    %181 = arith.index_cast %c6_i32 : i32 to index
    %c0_64 = arith.constant 0 : index
    %c0_65 = arith.constant 0 : index
    %182 = vector.load %arg14[%181, %c0_64, %c0_65] : memref<8x8x32xf32, #tpu.memory_space<vmem>>, vector<1x8x32xf32>
    %183 = vector.shape_cast %182 : vector<1x8x32xf32> to vector<8x32xf32>
    %184 = vector.shape_cast %180 : vector<8x32xf32> to vector<1x8x32xf32>
    tpu.vector_store %arg14[%181, %c0_64, %c0_65], %184 {strides = array<i32>} : memref<8x8x32xf32, #tpu.memory_space<vmem>>, vector<1x8x32xf32>,
    %c7_i32 = arith.constant 7 : i32
    %185 = arith.index_cast %c7_i32 : i32 to index
    %c0_66 = arith.constant 0 : index
    %c0_67 = arith.constant 0 : index
    %186 = vector.load %arg13[%185, %c0_66, %c0_67] : memref<8x8x128xf32, #tpu.memory_space<vmem>>, vector<1x8x128xf32>
    %187 = vector.shape_cast %186 : vector<1x8x128xf32> to vector<8x128xf32>
    %c0_68 = arith.constant 0 : index
    %c0_69 = arith.constant 0 : index
    %188 = vector.load %arg2[%c0_68, %c0_69] : memref<32x128xf32, #tpu.memory_space<vmem>>, vector<32x128xf32>
    %cst_70 = arith.constant dense<0.000000e+00> : vector<8x128xf32>
    %189 = tpu.matmul %180, %188, %cst_70 {dimension_numbers = #tpu.dot_dimension_numbers<[1], [0], [0], [1], [0, 0, 1, 1], [], []>} : vector<8x32xf32>, vector<32x128xf32>, vector<8x128xf32> -> vector<8x128xf32>
    %190 = arith.addf %187, %189 : vector<8x128xf32>
    %191 = arith.negf %190 : vector<8x128xf32>
    %192 = math.exp %191 : vector<8x128xf32>
    %cst_71 = arith.constant 1.000000e+00 : f32
    %193 = vector.broadcast %cst_71 : f32 to vector<8x128xf32>
    %194 = arith.addf %193, %192 : vector<8x128xf32>
    %195 = arith.divf %193, %194 : vector<8x128xf32>
    %196 = math.tanh %190 : vector<8x128xf32>
    %197 = vector.extract_strided_slice %195 {offsets = [0, 0], sizes = [8, 32], strides = [1, 1]} : vector<8x128xf32> to vector<8x32xf32>
    %198 = vector.extract_strided_slice %195 {offsets = [0, 32], sizes = [8, 32], strides = [1, 1]} : vector<8x128xf32> to vector<8x32xf32>
    %199 = vector.extract_strided_slice %196 {offsets = [0, 64], sizes = [8, 32], strides = [1, 1]} : vector<8x128xf32> to vector<8x32xf32>
    %200 = vector.extract_strided_slice %195 {offsets = [0, 96], sizes = [8, 32], strides = [1, 1]} : vector<8x128xf32> to vector<8x32xf32>
    %201 = arith.mulf %198, %178 : vector<8x32xf32>
    %202 = arith.mulf %197, %199 : vector<8x32xf32>
    %203 = arith.addf %201, %202 : vector<8x32xf32>
    %204 = math.tanh %203 : vector<8x32xf32>
    %205 = arith.mulf %200, %204 : vector<8x32xf32>
    %206 = arith.index_cast %c7_i32 : i32 to index
    %c0_72 = arith.constant 0 : index
    %c0_73 = arith.constant 0 : index
    %207 = vector.load %arg14[%206, %c0_72, %c0_73] : memref<8x8x32xf32, #tpu.memory_space<vmem>>, vector<1x8x32xf32>
    %208 = vector.shape_cast %207 : vector<1x8x32xf32> to vector<8x32xf32>
    %209 = vector.shape_cast %205 : vector<8x32xf32> to vector<1x8x32xf32>
    tpu.vector_store %arg14[%206, %c0_72, %c0_73], %209 {strides = array<i32>} : memref<8x8x32xf32, #tpu.memory_space<vmem>>, vector<1x8x32xf32>,
    %c8_i32 = arith.constant 8 : i32
    %c0_74 = arith.constant 0 : index
    %c0_75 = arith.constant 0 : index
    %c0_76 = arith.constant 0 : index
    %210 = vector.load %arg14[%c0_74, %c0_75, %c0_76] : memref<8x8x32xf32, #tpu.memory_space<vmem>>, vector<8x8x32xf32>
    %211 = vector.shape_cast %210 : vector<8x8x32xf32> to vector<64x32xf32>
    %c0_77 = arith.constant 0 : index
    %c0_78 = arith.constant 0 : index
    %212 = vector.load %arg4[%c0_77, %c0_78] : memref<32x128xf32, #tpu.memory_space<vmem>>, vector<32x128xf32>
    %cst_79 = arith.constant dense<0.000000e+00> : vector<64x128xf32>
    %213 = tpu.matmul %211, %212, %cst_79 {dimension_numbers = #tpu.dot_dimension_numbers<[1], [0], [0], [1], [0, 0, 1, 1], [], []>} : vector<64x32xf32>, vector<32x128xf32>, vector<64x128xf32> -> vector<64x128xf32>
    %c0_80 = arith.constant 0 : index
    %c0_81 = arith.constant 0 : index
    %214 = vector.load %arg6[%c0_80, %c0_81] : memref<1x128xf32, #tpu.memory_space<vmem>>, vector<1x128xf32>
    %215 = vector.broadcast %214 : vector<1x128xf32> to vector<64x128xf32>
    %216 = arith.addf %213, %215 : vector<64x128xf32>
    %217 = vector.shape_cast %216 : vector<64x128xf32> to vector<8x8x128xf32>
    %c0_82 = arith.constant 0 : index
    %c0_83 = arith.constant 0 : index
    %c0_84 = arith.constant 0 : index
    %218 = vector.load %arg13[%c0_82, %c0_83, %c0_84] : memref<8x8x128xf32, #tpu.memory_space<vmem>>, vector<8x8x128xf32>
    tpu.vector_store %arg13[%c0_82, %c0_83, %c0_84], %217 {strides = array<i32>} : memref<8x8x128xf32, #tpu.memory_space<vmem>>, vector<8x8x128xf32>,
    %cst_85 = arith.constant 0.000000e+00 : f32
    %219 = vector.broadcast %cst_85 : f32 to vector<8x32xf32>
    %c0_i32_86 = arith.constant 0 : i32
    %220 = arith.index_cast %c0_i32_86 : i32 to index
    %c0_87 = arith.constant 0 : index
    %c0_88 = arith.constant 0 : index
    %221 = vector.load %arg13[%220, %c0_87, %c0_88] : memref<8x8x128xf32, #tpu.memory_space<vmem>>, vector<1x8x128xf32>
    %222 = vector.shape_cast %221 : vector<1x8x128xf32> to vector<8x128xf32>
    %c0_89 = arith.constant 0 : index
    %c0_90 = arith.constant 0 : index
    %223 = vector.load %arg5[%c0_89, %c0_90] : memref<32x128xf32, #tpu.memory_space<vmem>>, vector<32x128xf32>
    %cst_91 = arith.constant dense<0.000000e+00> : vector<8x128xf32>
    %224 = tpu.matmul %219, %223, %cst_91 {dimension_numbers = #tpu.dot_dimension_numbers<[1], [0], [0], [1], [0, 0, 1, 1], [], []>} : vector<8x32xf32>, vector<32x128xf32>, vector<8x128xf32> -> vector<8x128xf32>
    %225 = arith.addf %222, %224 : vector<8x128xf32>
    %226 = arith.negf %225 : vector<8x128xf32>
    %227 = math.exp %226 : vector<8x128xf32>
    %cst_92 = arith.constant 1.000000e+00 : f32
    %228 = vector.broadcast %cst_92 : f32 to vector<8x128xf32>
    %229 = arith.addf %228, %227 : vector<8x128xf32>
    %230 = arith.divf %228, %229 : vector<8x128xf32>
    %231 = math.tanh %225 : vector<8x128xf32>
    %232 = vector.extract_strided_slice %230 {offsets = [0, 0], sizes = [8, 32], strides = [1, 1]} : vector<8x128xf32> to vector<8x32xf32>
    %233 = vector.extract_strided_slice %230 {offsets = [0, 32], sizes = [8, 32], strides = [1, 1]} : vector<8x128xf32> to vector<8x32xf32>
    %234 = vector.extract_strided_slice %231 {offsets = [0, 64], sizes = [8, 32], strides = [1, 1]} : vector<8x128xf32> to vector<8x32xf32>
    %235 = vector.extract_strided_slice %230 {offsets = [0, 96], sizes = [8, 32], strides = [1, 1]} : vector<8x128xf32> to vector<8x32xf32>
    %236 = arith.mulf %233, %219 : vector<8x32xf32>
    %237 = arith.mulf %232, %234 : vector<8x32xf32>
    %238 = arith.addf %236, %237 : vector<8x32xf32>
    %239 = math.tanh %238 : vector<8x32xf32>
    %240 = arith.mulf %235, %239 : vector<8x32xf32>
    %c1_i32_93 = arith.constant 1 : i32
    %241 = arith.index_cast %c1_i32_93 : i32 to index
    %c0_94 = arith.constant 0 : index
    %c0_95 = arith.constant 0 : index
    %242 = vector.load %arg13[%241, %c0_94, %c0_95] : memref<8x8x128xf32, #tpu.memory_space<vmem>>, vector<1x8x128xf32>
    %243 = vector.shape_cast %242 : vector<1x8x128xf32> to vector<8x128xf32>
    %c0_96 = arith.constant 0 : index
    %c0_97 = arith.constant 0 : index
    %244 = vector.load %arg5[%c0_96, %c0_97] : memref<32x128xf32, #tpu.memory_space<vmem>>, vector<32x128xf32>
    %cst_98 = arith.constant dense<0.000000e+00> : vector<8x128xf32>
    %245 = tpu.matmul %240, %244, %cst_98 {dimension_numbers = #tpu.dot_dimension_numbers<[1], [0], [0], [1], [0, 0, 1, 1], [], []>} : vector<8x32xf32>, vector<32x128xf32>, vector<8x128xf32> -> vector<8x128xf32>
    %246 = arith.addf %243, %245 : vector<8x128xf32>
    %247 = arith.negf %246 : vector<8x128xf32>
    %248 = math.exp %247 : vector<8x128xf32>
    %cst_99 = arith.constant 1.000000e+00 : f32
    %249 = vector.broadcast %cst_99 : f32 to vector<8x128xf32>
    %250 = arith.addf %249, %248 : vector<8x128xf32>
    %251 = arith.divf %249, %250 : vector<8x128xf32>
    %252 = math.tanh %246 : vector<8x128xf32>
    %253 = vector.extract_strided_slice %251 {offsets = [0, 0], sizes = [8, 32], strides = [1, 1]} : vector<8x128xf32> to vector<8x32xf32>
    %254 = vector.extract_strided_slice %251 {offsets = [0, 32], sizes = [8, 32], strides = [1, 1]} : vector<8x128xf32> to vector<8x32xf32>
    %255 = vector.extract_strided_slice %252 {offsets = [0, 64], sizes = [8, 32], strides = [1, 1]} : vector<8x128xf32> to vector<8x32xf32>
    %256 = vector.extract_strided_slice %251 {offsets = [0, 96], sizes = [8, 32], strides = [1, 1]} : vector<8x128xf32> to vector<8x32xf32>
    %257 = arith.mulf %254, %238 : vector<8x32xf32>
    %258 = arith.mulf %253, %255 : vector<8x32xf32>
    %259 = arith.addf %257, %258 : vector<8x32xf32>
    %260 = math.tanh %259 : vector<8x32xf32>
    %261 = arith.mulf %256, %260 : vector<8x32xf32>
    %c2_i32_100 = arith.constant 2 : i32
    %262 = arith.index_cast %c2_i32_100 : i32 to index
    %c0_101 = arith.constant 0 : index
    %c0_102 = arith.constant 0 : index
    %263 = vector.load %arg13[%262, %c0_101, %c0_102] : memref<8x8x128xf32, #tpu.memory_space<vmem>>, vector<1x8x128xf32>
    %264 = vector.shape_cast %263 : vector<1x8x128xf32> to vector<8x128xf32>
    %c0_103 = arith.constant 0 : index
    %c0_104 = arith.constant 0 : index
    %265 = vector.load %arg5[%c0_103, %c0_104] : memref<32x128xf32, #tpu.memory_space<vmem>>, vector<32x128xf32>
    %cst_105 = arith.constant dense<0.000000e+00> : vector<8x128xf32>
    %266 = tpu.matmul %261, %265, %cst_105 {dimension_numbers = #tpu.dot_dimension_numbers<[1], [0], [0], [1], [0, 0, 1, 1], [], []>} : vector<8x32xf32>, vector<32x128xf32>, vector<8x128xf32> -> vector<8x128xf32>
    %267 = arith.addf %264, %266 : vector<8x128xf32>
    %268 = arith.negf %267 : vector<8x128xf32>
    %269 = math.exp %268 : vector<8x128xf32>
    %cst_106 = arith.constant 1.000000e+00 : f32
    %270 = vector.broadcast %cst_106 : f32 to vector<8x128xf32>
    %271 = arith.addf %270, %269 : vector<8x128xf32>
    %272 = arith.divf %270, %271 : vector<8x128xf32>
    %273 = math.tanh %267 : vector<8x128xf32>
    %274 = vector.extract_strided_slice %272 {offsets = [0, 0], sizes = [8, 32], strides = [1, 1]} : vector<8x128xf32> to vector<8x32xf32>
    %275 = vector.extract_strided_slice %272 {offsets = [0, 32], sizes = [8, 32], strides = [1, 1]} : vector<8x128xf32> to vector<8x32xf32>
    %276 = vector.extract_strided_slice %273 {offsets = [0, 64], sizes = [8, 32], strides = [1, 1]} : vector<8x128xf32> to vector<8x32xf32>
    %277 = vector.extract_strided_slice %272 {offsets = [0, 96], sizes = [8, 32], strides = [1, 1]} : vector<8x128xf32> to vector<8x32xf32>
    %278 = arith.mulf %275, %259 : vector<8x32xf32>
    %279 = arith.mulf %274, %276 : vector<8x32xf32>
    %280 = arith.addf %278, %279 : vector<8x32xf32>
    %281 = math.tanh %280 : vector<8x32xf32>
    %282 = arith.mulf %277, %281 : vector<8x32xf32>
    %c3_i32_107 = arith.constant 3 : i32
    %283 = arith.index_cast %c3_i32_107 : i32 to index
    %c0_108 = arith.constant 0 : index
    %c0_109 = arith.constant 0 : index
    %284 = vector.load %arg13[%283, %c0_108, %c0_109] : memref<8x8x128xf32, #tpu.memory_space<vmem>>, vector<1x8x128xf32>
    %285 = vector.shape_cast %284 : vector<1x8x128xf32> to vector<8x128xf32>
    %c0_110 = arith.constant 0 : index
    %c0_111 = arith.constant 0 : index
    %286 = vector.load %arg5[%c0_110, %c0_111] : memref<32x128xf32, #tpu.memory_space<vmem>>, vector<32x128xf32>
    %cst_112 = arith.constant dense<0.000000e+00> : vector<8x128xf32>
    %287 = tpu.matmul %282, %286, %cst_112 {dimension_numbers = #tpu.dot_dimension_numbers<[1], [0], [0], [1], [0, 0, 1, 1], [], []>} : vector<8x32xf32>, vector<32x128xf32>, vector<8x128xf32> -> vector<8x128xf32>
    %288 = arith.addf %285, %287 : vector<8x128xf32>
    %289 = arith.negf %288 : vector<8x128xf32>
    %290 = math.exp %289 : vector<8x128xf32>
    %cst_113 = arith.constant 1.000000e+00 : f32
    %291 = vector.broadcast %cst_113 : f32 to vector<8x128xf32>
    %292 = arith.addf %291, %290 : vector<8x128xf32>
    %293 = arith.divf %291, %292 : vector<8x128xf32>
    %294 = math.tanh %288 : vector<8x128xf32>
    %295 = vector.extract_strided_slice %293 {offsets = [0, 0], sizes = [8, 32], strides = [1, 1]} : vector<8x128xf32> to vector<8x32xf32>
    %296 = vector.extract_strided_slice %293 {offsets = [0, 32], sizes = [8, 32], strides = [1, 1]} : vector<8x128xf32> to vector<8x32xf32>
    %297 = vector.extract_strided_slice %294 {offsets = [0, 64], sizes = [8, 32], strides = [1, 1]} : vector<8x128xf32> to vector<8x32xf32>
    %298 = vector.extract_strided_slice %293 {offsets = [0, 96], sizes = [8, 32], strides = [1, 1]} : vector<8x128xf32> to vector<8x32xf32>
    %299 = arith.mulf %296, %280 : vector<8x32xf32>
    %300 = arith.mulf %295, %297 : vector<8x32xf32>
    %301 = arith.addf %299, %300 : vector<8x32xf32>
    %302 = math.tanh %301 : vector<8x32xf32>
    %303 = arith.mulf %298, %302 : vector<8x32xf32>
    %c4_i32_114 = arith.constant 4 : i32
    %304 = arith.index_cast %c4_i32_114 : i32 to index
    %c0_115 = arith.constant 0 : index
    %c0_116 = arith.constant 0 : index
    %305 = vector.load %arg13[%304, %c0_115, %c0_116] : memref<8x8x128xf32, #tpu.memory_space<vmem>>, vector<1x8x128xf32>
    %306 = vector.shape_cast %305 : vector<1x8x128xf32> to vector<8x128xf32>
    %c0_117 = arith.constant 0 : index
    %c0_118 = arith.constant 0 : index
    %307 = vector.load %arg5[%c0_117, %c0_118] : memref<32x128xf32, #tpu.memory_space<vmem>>, vector<32x128xf32>
    %cst_119 = arith.constant dense<0.000000e+00> : vector<8x128xf32>
    %308 = tpu.matmul %303, %307, %cst_119 {dimension_numbers = #tpu.dot_dimension_numbers<[1], [0], [0], [1], [0, 0, 1, 1], [], []>} : vector<8x32xf32>, vector<32x128xf32>, vector<8x128xf32> -> vector<8x128xf32>
    %309 = arith.addf %306, %308 : vector<8x128xf32>
    %310 = arith.negf %309 : vector<8x128xf32>
    %311 = math.exp %310 : vector<8x128xf32>
    %cst_120 = arith.constant 1.000000e+00 : f32
    %312 = vector.broadcast %cst_120 : f32 to vector<8x128xf32>
    %313 = arith.addf %312, %311 : vector<8x128xf32>
    %314 = arith.divf %312, %313 : vector<8x128xf32>
    %315 = math.tanh %309 : vector<8x128xf32>
    %316 = vector.extract_strided_slice %314 {offsets = [0, 0], sizes = [8, 32], strides = [1, 1]} : vector<8x128xf32> to vector<8x32xf32>
    %317 = vector.extract_strided_slice %314 {offsets = [0, 32], sizes = [8, 32], strides = [1, 1]} : vector<8x128xf32> to vector<8x32xf32>
    %318 = vector.extract_strided_slice %315 {offsets = [0, 64], sizes = [8, 32], strides = [1, 1]} : vector<8x128xf32> to vector<8x32xf32>
    %319 = vector.extract_strided_slice %314 {offsets = [0, 96], sizes = [8, 32], strides = [1, 1]} : vector<8x128xf32> to vector<8x32xf32>
    %320 = arith.mulf %317, %301 : vector<8x32xf32>
    %321 = arith.mulf %316, %318 : vector<8x32xf32>
    %322 = arith.addf %320, %321 : vector<8x32xf32>
    %323 = math.tanh %322 : vector<8x32xf32>
    %324 = arith.mulf %319, %323 : vector<8x32xf32>
    %c5_i32_121 = arith.constant 5 : i32
    %325 = arith.index_cast %c5_i32_121 : i32 to index
    %c0_122 = arith.constant 0 : index
    %c0_123 = arith.constant 0 : index
    %326 = vector.load %arg13[%325, %c0_122, %c0_123] : memref<8x8x128xf32, #tpu.memory_space<vmem>>, vector<1x8x128xf32>
    %327 = vector.shape_cast %326 : vector<1x8x128xf32> to vector<8x128xf32>
    %c0_124 = arith.constant 0 : index
    %c0_125 = arith.constant 0 : index
    %328 = vector.load %arg5[%c0_124, %c0_125] : memref<32x128xf32, #tpu.memory_space<vmem>>, vector<32x128xf32>
    %cst_126 = arith.constant dense<0.000000e+00> : vector<8x128xf32>
    %329 = tpu.matmul %324, %328, %cst_126 {dimension_numbers = #tpu.dot_dimension_numbers<[1], [0], [0], [1], [0, 0, 1, 1], [], []>} : vector<8x32xf32>, vector<32x128xf32>, vector<8x128xf32> -> vector<8x128xf32>
    %330 = arith.addf %327, %329 : vector<8x128xf32>
    %331 = arith.negf %330 : vector<8x128xf32>
    %332 = math.exp %331 : vector<8x128xf32>
    %cst_127 = arith.constant 1.000000e+00 : f32
    %333 = vector.broadcast %cst_127 : f32 to vector<8x128xf32>
    %334 = arith.addf %333, %332 : vector<8x128xf32>
    %335 = arith.divf %333, %334 : vector<8x128xf32>
    %336 = math.tanh %330 : vector<8x128xf32>
    %337 = vector.extract_strided_slice %335 {offsets = [0, 0], sizes = [8, 32], strides = [1, 1]} : vector<8x128xf32> to vector<8x32xf32>
    %338 = vector.extract_strided_slice %335 {offsets = [0, 32], sizes = [8, 32], strides = [1, 1]} : vector<8x128xf32> to vector<8x32xf32>
    %339 = vector.extract_strided_slice %336 {offsets = [0, 64], sizes = [8, 32], strides = [1, 1]} : vector<8x128xf32> to vector<8x32xf32>
    %340 = vector.extract_strided_slice %335 {offsets = [0, 96], sizes = [8, 32], strides = [1, 1]} : vector<8x128xf32> to vector<8x32xf32>
    %341 = arith.mulf %338, %322 : vector<8x32xf32>
    %342 = arith.mulf %337, %339 : vector<8x32xf32>
    %343 = arith.addf %341, %342 : vector<8x32xf32>
    %344 = math.tanh %343 : vector<8x32xf32>
    %345 = arith.mulf %340, %344 : vector<8x32xf32>
    %c6_i32_128 = arith.constant 6 : i32
    %346 = arith.index_cast %c6_i32_128 : i32 to index
    %c0_129 = arith.constant 0 : index
    %c0_130 = arith.constant 0 : index
    %347 = vector.load %arg13[%346, %c0_129, %c0_130] : memref<8x8x128xf32, #tpu.memory_space<vmem>>, vector<1x8x128xf32>
    %348 = vector.shape_cast %347 : vector<1x8x128xf32> to vector<8x128xf32>
    %c0_131 = arith.constant 0 : index
    %c0_132 = arith.constant 0 : index
    %349 = vector.load %arg5[%c0_131, %c0_132] : memref<32x128xf32, #tpu.memory_space<vmem>>, vector<32x128xf32>
    %cst_133 = arith.constant dense<0.000000e+00> : vector<8x128xf32>
    %350 = tpu.matmul %345, %349, %cst_133 {dimension_numbers = #tpu.dot_dimension_numbers<[1], [0], [0], [1], [0, 0, 1, 1], [], []>} : vector<8x32xf32>, vector<32x128xf32>, vector<8x128xf32> -> vector<8x128xf32>
    %351 = arith.addf %348, %350 : vector<8x128xf32>
    %352 = arith.negf %351 : vector<8x128xf32>
    %353 = math.exp %352 : vector<8x128xf32>
    %cst_134 = arith.constant 1.000000e+00 : f32
    %354 = vector.broadcast %cst_134 : f32 to vector<8x128xf32>
    %355 = arith.addf %354, %353 : vector<8x128xf32>
    %356 = arith.divf %354, %355 : vector<8x128xf32>
    %357 = math.tanh %351 : vector<8x128xf32>
    %358 = vector.extract_strided_slice %356 {offsets = [0, 0], sizes = [8, 32], strides = [1, 1]} : vector<8x128xf32> to vector<8x32xf32>
    %359 = vector.extract_strided_slice %356 {offsets = [0, 32], sizes = [8, 32], strides = [1, 1]} : vector<8x128xf32> to vector<8x32xf32>
    %360 = vector.extract_strided_slice %357 {offsets = [0, 64], sizes = [8, 32], strides = [1, 1]} : vector<8x128xf32> to vector<8x32xf32>
    %361 = vector.extract_strided_slice %356 {offsets = [0, 96], sizes = [8, 32], strides = [1, 1]} : vector<8x128xf32> to vector<8x32xf32>
    %362 = arith.mulf %359, %343 : vector<8x32xf32>
    %363 = arith.mulf %358, %360 : vector<8x32xf32>
    %364 = arith.addf %362, %363 : vector<8x32xf32>
    %365 = math.tanh %364 : vector<8x32xf32>
    %366 = arith.mulf %361, %365 : vector<8x32xf32>
    %c7_i32_135 = arith.constant 7 : i32
    %367 = arith.index_cast %c7_i32_135 : i32 to index
    %c0_136 = arith.constant 0 : index
    %c0_137 = arith.constant 0 : index
    %368 = vector.load %arg13[%367, %c0_136, %c0_137] : memref<8x8x128xf32, #tpu.memory_space<vmem>>, vector<1x8x128xf32>
    %369 = vector.shape_cast %368 : vector<1x8x128xf32> to vector<8x128xf32>
    %c0_138 = arith.constant 0 : index
    %c0_139 = arith.constant 0 : index
    %370 = vector.load %arg5[%c0_138, %c0_139] : memref<32x128xf32, #tpu.memory_space<vmem>>, vector<32x128xf32>
    %cst_140 = arith.constant dense<0.000000e+00> : vector<8x128xf32>
    %371 = tpu.matmul %366, %370, %cst_140 {dimension_numbers = #tpu.dot_dimension_numbers<[1], [0], [0], [1], [0, 0, 1, 1], [], []>} : vector<8x32xf32>, vector<32x128xf32>, vector<8x128xf32> -> vector<8x128xf32>
    %372 = arith.addf %369, %371 : vector<8x128xf32>
    %373 = arith.negf %372 : vector<8x128xf32>
    %374 = math.exp %373 : vector<8x128xf32>
    %cst_141 = arith.constant 1.000000e+00 : f32
    %375 = vector.broadcast %cst_141 : f32 to vector<8x128xf32>
    %376 = arith.addf %375, %374 : vector<8x128xf32>
    %377 = arith.divf %375, %376 : vector<8x128xf32>
    %378 = math.tanh %372 : vector<8x128xf32>
    %379 = vector.extract_strided_slice %377 {offsets = [0, 0], sizes = [8, 32], strides = [1, 1]} : vector<8x128xf32> to vector<8x32xf32>
    %380 = vector.extract_strided_slice %377 {offsets = [0, 32], sizes = [8, 32], strides = [1, 1]} : vector<8x128xf32> to vector<8x32xf32>
    %381 = vector.extract_strided_slice %378 {offsets = [0, 64], sizes = [8, 32], strides = [1, 1]} : vector<8x128xf32> to vector<8x32xf32>
    %382 = vector.extract_strided_slice %377 {offsets = [0, 96], sizes = [8, 32], strides = [1, 1]} : vector<8x128xf32> to vector<8x32xf32>
    %383 = arith.mulf %380, %364 : vector<8x32xf32>
    %384 = arith.mulf %379, %381 : vector<8x32xf32>
    %385 = arith.addf %383, %384 : vector<8x32xf32>
    %386 = math.tanh %385 : vector<8x32xf32>
    %387 = arith.mulf %382, %386 : vector<8x32xf32>
    %c8_i32_142 = arith.constant 8 : i32
    %c0_143 = arith.constant 0 : index
    %c0_144 = arith.constant 0 : index
    %388 = vector.load %arg7[%c0_143, %c0_144] : memref<32x32xf32, #tpu.memory_space<vmem>>, vector<32x32xf32>
    %cst_145 = arith.constant dense<0.000000e+00> : vector<8x32xf32>
    %389 = tpu.matmul %387, %388, %cst_145 {dimension_numbers = #tpu.dot_dimension_numbers<[1], [0], [0], [1], [0, 0, 1, 1], [], []>} : vector<8x32xf32>, vector<32x32xf32>, vector<8x32xf32> -> vector<8x32xf32>
    %c0_146 = arith.constant 0 : index
    %c0_147 = arith.constant 0 : index
    %390 = vector.load %arg8[%c0_146, %c0_147] : memref<1x32xf32, #tpu.memory_space<vmem>>, vector<1x32xf32>
    %391 = vector.broadcast %390 : vector<1x32xf32> to vector<8x32xf32>
    %392 = arith.addf %389, %391 : vector<8x32xf32>
    %cst_148 = arith.constant 0.000000e+00 : f32
    %393 = vector.broadcast %cst_148 : f32 to vector<8x32xf32>
    %394 = arith.cmpf ogt, %392, %393 : vector<8x32xf32>
    %cst_149 = arith.constant 0.00999999977 : f32
    %395 = vector.broadcast %cst_149 : f32 to vector<8x32xf32>
    %396 = arith.mulf %395, %392 : vector<8x32xf32>
    %397 = arith.select %394, %392, %396 : vector<8x32xi1>, vector<8x32xf32>
    %c0_150 = arith.constant 0 : index
    %c0_151 = arith.constant 0 : index
    %398 = vector.load %arg9[%c0_150, %c0_151] : memref<32x32xf32, #tpu.memory_space<vmem>>, vector<32x32xf32>
    %cst_152 = arith.constant dense<0.000000e+00> : vector<8x32xf32>
    %399 = tpu.matmul %397, %398, %cst_152 {dimension_numbers = #tpu.dot_dimension_numbers<[1], [0], [0], [1], [0, 0, 1, 1], [], []>} : vector<8x32xf32>, vector<32x32xf32>, vector<8x32xf32> -> vector<8x32xf32>
    %c0_153 = arith.constant 0 : index
    %c0_154 = arith.constant 0 : index
    %400 = vector.load %arg10[%c0_153, %c0_154] : memref<1x32xf32, #tpu.memory_space<vmem>>, vector<1x32xf32>
    %401 = vector.broadcast %400 : vector<1x32xf32> to vector<8x32xf32>
    %402 = arith.addf %399, %401 : vector<8x32xf32>
    %cst_155 = arith.constant 0.000000e+00 : f32
    %403 = vector.broadcast %cst_155 : f32 to vector<8x32xf32>
    %404 = arith.cmpf ogt, %402, %403 : vector<8x32xf32>
    %cst_156 = arith.constant 0.00999999977 : f32
    %405 = vector.broadcast %cst_156 : f32 to vector<8x32xf32>
    %406 = arith.mulf %405, %402 : vector<8x32xf32>
    %407 = arith.select %404, %402, %406 : vector<8x32xi1>, vector<8x32xf32>
    %c0_157 = arith.constant 0 : index
    %c0_158 = arith.constant 0 : index
    %408 = vector.load %arg11[%c0_157, %c0_158] : memref<32x128xf32, #tpu.memory_space<vmem>>, vector<32x128xf32>
    %cst_159 = arith.constant dense<0.000000e+00> : vector<8x128xf32>
    %409 = tpu.matmul %407, %408, %cst_159 {dimension_numbers = #tpu.dot_dimension_numbers<[1], [0], [0], [1], [0, 0, 1, 1], [], []>} : vector<8x32xf32>, vector<32x128xf32>, vector<8x128xf32> -> vector<8x128xf32>
    %410 = arith.negf %409 : vector<8x128xf32>
    %411 = math.exp %410 : vector<8x128xf32>
    %cst_160 = arith.constant 1.000000e+00 : f32
    %412 = vector.broadcast %cst_160 : f32 to vector<8x128xf32>
    %413 = arith.addf %412, %411 : vector<8x128xf32>
    %414 = arith.divf %412, %413 : vector<8x128xf32>
    %c0_161 = arith.constant 0 : index
    %c0_162 = arith.constant 0 : index
    %415 = vector.load %arg12[%c0_161, %c0_162] : memref<8x128xf32, #tpu.memory_space<vmem>>, vector<8x128xf32>
    tpu.vector_store %arg12[%c0_161, %c0_162], %414 {strides = array<i32>} : memref<8x128xf32, #tpu.memory_space<vmem>>, vector<8x128xf32>,
    return
  }
}

</mosaic_0001>

<bundles_post_ra>
// kernel: critic_forward.1
= control target key start
LH: loop header
LB: loop body
LE: loop exit
PB: predicated region body
PF: predicated region fallthrough
CT: control target
= control target key end

     0   :  { %17 = vsyncpa [#allocation5], 0  ;;  %s2165_s0 = inlined_call_operand.vmem [shape: f32[8,8,8], index: 0, kind: input, shape index: {}]   ;;  %s2166_s1 = inlined_call_operand.vmem [shape: f32[8,128], index: 1, kind: input, shape index: {}]   ;;  %s2167_s2 = inlined_call_operand.vmem [shape: f32[32,128], index: 2, kind: input, shape index: {}]   ;;  %s2168_s3 = inlined_call_operand.vmem [shape: f32[1,128], index: 3, kind: input, shape index: {}]   ;;  %s2169_s4 = inlined_call_operand.vmem [shape: f32[32,128], index: 4, kind: input, shape index: {}]   ;;  %s2170_s5 = inlined_call_operand.hbm [shape: f32[32,128], index: 5, kind: input, shape index: {}]   ;;  %s2171_s6 = inlined_call_operand.vmem [shape: f32[1,128], index: 6, kind: input, shape index: {}]   ;;  %s2172_s7 = inlined_call_operand.hbm [shape: f32[32,32], index: 7, kind: input, shape index: {}]   ;;  %s2173_s8 = inlined_call_operand.vmem [shape: f32[1,32], index: 8, kind: input, shape index: {}]   ;;  %s2174_s9 = inlined_call_operand.hbm [shape: f32[32,32], index: 9, kind: input, shape index: {}]   ;;  %s2175_s10 = inlined_call_operand.vmem [shape: f32[1,32], index: 10, kind: input, shape index: {}]   ;;  %s2176_s11 = inlined_call_operand.hbm [shape: f32[32,128], index: 11, kind: input, shape index: {}]   ;;  %s2177_s12 = inlined_call_operand.vmem [shape: f32[8,128], index: 12, kind: output, shape index: {}]  }
   0x1   :  { %18 = vsyncpa [#allocation7], 0 }
   0x2   :  { %19 = vsyncpa [#allocation10], 0  ;;  %s49_s23 = sshll.u32 %s2172_s7, 4  ;;  %s1789_s24 = smov [#allocation6]   ;;  %s50_s23 = int_to_ptr.hbm [resolvable:$true] %s49_s23 }
   0x3   :  { %s51_s25 = sshll.u32 %s1789_s24, 4  ;;  %s34_s28 = sshll.u32 %s2170_s5, 4  ;;  %s52_s25 = int_to_ptr.vmem [resolvable:$true] %s51_s25  ;;  %s35_s28 = int_to_ptr.hbm [resolvable:$true] %s34_s28 }
   0x4   :  { %s1790_s29 = smov 128   ;;  %s1791_s30 = smov 8  }
   0x5   :  { %57 = dma.hbm_to_vmem [thread:$0]  %s50_s23, 512, %s52_s25, [#allocation7], %s1790_s29, %s1790_s29, %s1791_s30  }
   0x6   :  { %s1792_s13 = smov [#allocation4]   ;;  %s64_s17 = sshll.u32 %s2174_s9, 4  ;;  %s65_s17 = int_to_ptr.hbm [resolvable:$true] %s64_s17 }
   0x7   :  { %s36_s14 = sshll.u32 %s1792_s13, 4  ;;  %s79_s19 = sshll.u32 %s2176_s11, 4  ;;  %s37_s14 = int_to_ptr.vmem [resolvable:$true] %s36_s14  ;;  %s80_s19 = int_to_ptr.hbm [resolvable:$true] %s79_s19 }
   0x8   :  { %42 = dma.hbm_to_vmem [thread:$0]  %s35_s28, 512, %s37_s14, [#allocation5], %s1790_s29, %s1790_s29, %s1791_s30  }
   0x9   :  { %s1793_s20 = smov [#allocation8]   ;;  %s1794_s5 = smov [#allocation9]  }
   0xa   :  { %s66_s21 = sshll.u32 %s1793_s20, 4  ;;  %s81_s22 = sshll.u32 %s1794_s5, 4  ;;  %s67_s21 = int_to_ptr.vmem [resolvable:$true] %s66_s21  ;;  %s82_s22 = int_to_ptr.vmem [resolvable:$true] %s81_s22 }
   0xb   :  { %72 = dma.hbm_to_vmem [thread:$0]  %s65_s17, 512, %s67_s21, [#allocation7], %s1790_s29, %s1790_s29, %s1791_s30  }
   0xc   :  { %87 = dma.hbm_to_vmem [thread:$0]  %s80_s19, 512, %s82_s22, [#allocation10], %s1790_s29, %s1790_s29, %s1791_s30  }
   0xd   :  { %1783 = dma.done.wait [#allocation5], 512  }
   0xe   :  { %1784 = vsyncadd [#allocation5], 4294966784 }
   0xf   :  { %1785 = dma.done.wait [#allocation7], 1024  }
  0x10   :  { %1786 = vsyncadd [#allocation7], 4294966272 }
  0x11   :  { %1787 = dma.done.wait [#allocation10], 512  }
  0x12   :  { %1788 = vsyncadd [#allocation10], 4294966784  ;;  %vm117_vm0 = vcmask 64512   ;;  %v1878_v0 = vld [vmem:[%s2167_s2 + $0x18] sm:$0xff]  ;;  %v1883_v1 = vld [vmem:[%s2167_s2 + $0x10] sm:$0xff]  ;;  %v1795_v6 = vmov 0.0  }
  0x13   :  { %v112_v2 = vld [vmem:[%s2166_s1] sm:$0xff]  ;;  %212 = vmatpush.msra.mxu1 %v1878_v0  ;;  %v1895_v4 = vld [vmem:[%s2167_s2 + $0x8] sm:$0xff]  ;;  %283 = vmatpush.msra.mxu2 %v1878_v0  ;;  %s1796_s15 = smov 64   ;;  %s1797_s16 = smov 32   ;;  %vm196_vm5 = vcmask 261120   ;;  %v106_v60 = vld [vmem:[%s2165_s0 + $0x10] sm:$0xff] }
  0x14   :  { %157 = vmatpush.msra.mxu0 %v112_v2  ;;  %v104_v3 = vld [vmem:[%s2165_s0] sm:$0xff]  ;;  %571 = vmatpush.msra.mxu3 %v1878_v0  ;;  %v105_v34 = vld [vmem:[%s2165_s0 + $0x8] sm:$0xff] }
  0x15   :  { %1491 = vmatmul.msk.f32.vlgmr.msra.gmra.mxu0 %vm117_vm0, %v104_v3  ;;  %213 = vmatpush.msra.mxu1 %v1883_v1  ;;  %v1904_v5 = vld [vmem:[%s2167_s2] sm:$0xff] }
  0x16   :  { %284 = vmatpush.msra.mxu2 %v1883_v1  ;;  %572 = vmatpush.msra.mxu3 %v1883_v1  ;;  %v1930_v7 = vld [vmem:[%s2168_s3] ss:$0 sm:$0xff] }
  0x17   :  { %214 = vmatpush.msra.mxu1 %v1895_v4 }
  0x18   :  { %285 = vmatpush.msra.mxu2 %v1895_v4  ;;  %573 = vmatpush.msra.mxu3 %v1895_v4 }
  0x19   :  { %215 = vmatpush.msra.mxu1 %v1904_v5 }
  0x1a   :  { %216 = vmatmul.f32.vlgmr.msra.gmra.mxu1 %v1795_v6  ;;  %286 = vmatpush.msra.mxu2 %v1904_v5 }
  0x1b   :  { %355 = vmatpush.msrb.mxu1 %v1878_v0  ;;  %574 = vmatpush.msra.mxu3 %v1904_v5 }
  0x1c   :  { %499 = vmatpush.msrb.mxu2 %v1878_v0 }
  0x1d   :  { %356 = vmatpush.msrb.mxu1 %v1883_v1  ;;  %1492 = vmatmul.msk.f32.gmra.mxu0 %vm117_vm0, %v105_v34 }
  0x1e   :  { %500 = vmatpush.msrb.mxu2 %v1883_v1 }
  0x1f   :  { %357 = vmatpush.msrb.mxu1 %v1895_v4 }
  0x20   :  { %501 = vmatpush.msrb.mxu2 %v1895_v4 }
  0x21   :  { %358 = vmatpush.msrb.mxu1 %v1904_v5 }
  0x22   :  { %502 = vmatpush.msrb.mxu2 %v1904_v5 }
  0x23   :  { %427 = vmatpush.msra.mxu1 %v1878_v0 }
  0x25   :  { %428 = vmatpush.msra.mxu1 %v1883_v1  ;;  %1493 = vmatmul.msk.f32.gmra.mxu0 %vm117_vm0, %v106_v60 }
  0x27   :  { %429 = vmatpush.msra.mxu1 %v1895_v4 }
  0x29   :  { %430 = vmatpush.msra.mxu1 %v1904_v5 }
  0x92   :  { %v159_v8 = vpop.f32.mrf.mxu0 }
  0x93   :  { %v160_v9 = vadd.f32 %v1930_v7, %v159_v8 }
  0x97   :  { %v217_v10 = vpop.f32.mrf.mxu1 }
  0x98   :  { %v220_v11 = vadd.f32 %v217_v10, %v160_v9 }
  0x9a   :  { %1554 = vtanh.f32 %v220_v11  ;;  %v1499_v13 = vmul.f32 -1.442695, %v220_v11  ;;  %v162_v36 = vpop.f32.mrf.mxu0 }
  0x9b   :  { %v163_v37 = vadd.f32 %v1930_v7, %v162_v36 }
  0x9c   :  { %1556 = vpow2.f32 %v1499_v13 }
  0xa0   :  { %v1555_v12 = vpop.eup %1554 }
  0xa1   :  { %243 = vrot.lane.b32.xlu0 %v1555_v12, %s1796_s15 }
  0xa2   :  { %v1557_v14 = vpop.eup %1556  ;;  %v165_v2 = vpop.f32.mrf.mxu0 }
  0xa3   :  { %v224_v15 = vadd.f32 1.0, %v1557_v14  ;;  %v166_v3 = vadd.f32 %v1930_v7, %v165_v2 }
  0xa5   :  { %1558 = vrcp.f32 %v224_v15  ;;  %v236_v21 = vand.u32 2147483648, %v224_v15  ;;  %vm230_vm2 = vweird.f32 %v224_v15  ;;  %v234_v22 = vand.u32 2147483647, %v224_v15 }
  0xa7   :  { %v237_v24 = vor.u32 1.1754944e-38, %v236_v21  ;;  %vm235_vm4 = vcmp.eq.f32.partialorder %v234_v22, 8.507059e+37 }
  0xab   :  { %v1559_v16 = vpop.eup %1558 }
  0xac   :  { %v226_v17 = vmul.f32 %v1559_v16, %v224_v15  ;;  %vm231_vm1 = vweird.f32 %v1559_v16 }
  0xad   :  { %vm232_vm3 = vmor %vm230_vm2, %vm231_vm1 }
  0xae   :  { %v227_v18 = vsub.f32 1.0, %v226_v17 }
  0xb0   :  { %v228_v19 = vmul.f32 %v1559_v16, %v227_v18 }
  0xb2   :  { %v229_v20 = vadd.f32 %v1559_v16, %v228_v19 }
  0xb4   :  { %v233_v23 = vsel %vm232_vm3, %v1559_v16, %v229_v20 }
  0xb5   :  { %v238_v26 = vsel %vm235_vm4, %v237_v24, %v233_v23 }
  0xb6   :  { %v241_v28 = vmul.f32 0.0, %v238_v26 }
 0x113   :  { %v244_v25 = vpop.permute.xlu0 %243 }
 0x114   :  { %v246_v27 = vmul.f32 %v244_v25, %v238_v26 }
 0x116   :  { %248 = vrot.lane.b32.xlu0 %v246_v27, %s1797_s16 }
 0x188   :  { %v249_v29 = vpop.permute.xlu0 %248 }
 0x189   :  { %v251_v30 = vadd.f32 %v249_v29, %v241_v28 }
 0x18b   :  { %1560 = vtanh.f32 %v251_v30 }
 0x191   :  { %v1561_v31 = vpop.eup %1560 }
 0x192   :  { %254 = vrot.lane.b32.xlu1 %v1561_v31, %s1796_s15 }
 0x204   :  { %v255_v32 = vpop.permute.xlu1 %254 }
 0x205   :  { %v257_v33 = vmul.f32 %v255_v32, %v238_v26  ;;  %v107_v26 = vld [vmem:[%s2165_s0 + $0x18] sm:$0xff] }
 0x206   :  { %1494 = vmatmul.msk.f32.gmra.mxu0 %vm117_vm0, %v107_v26  ;;  %v775_v26 = vld [vmem:[%s2169_s4] sm:$0xff] }
 0x207   :  { %259 = vrot.lane.b32.xlu1 %v257_v33, %s1797_s16 }
 0x279   :  { %v260_v35 = vpop.permute.xlu1 %259 }
 0x27a   :  { %262 = vst.msk [vmem:[#allocation3] sm:$0xff] %vm196_vm5, %v260_v35  ;;  %1500 = vmatmul.msk.f32.vlgmr.msra.gmra.mxu2 %vm196_vm5, %v260_v35 }
 0x27b   :  { %715 = vmatpush.msra.mxu2 %v1878_v0 }
 0x27d   :  { %716 = vmatpush.msra.mxu2 %v1883_v1 }
 0x27f   :  { %717 = vmatpush.msra.mxu2 %v1895_v4 }
 0x281   :  { %718 = vmatpush.msra.mxu2 %v1904_v5 }
 0x2fd   :  { %v288_v38 = vpop.f32.mrf.mxu2 }
 0x2fe   :  { %v291_v39 = vadd.f32 %v288_v38, %v163_v37 }
 0x300   :  { %1562 = vtanh.f32 %v291_v39  ;;  %v1501_v41 = vmul.f32 -1.442695, %v291_v39 }
 0x302   :  { %1564 = vpow2.f32 %v1501_v41 }
 0x306   :  { %v1563_v40 = vpop.eup %1562 }
 0x307   :  { %314 = vrot.lane.b32.xlu2 %v1563_v40, %s1796_s15 }
 0x308   :  { %v1565_v42 = vpop.eup %1564 }
 0x309   :  { %v295_v43 = vadd.f32 1.0, %v1565_v42 }
 0x30b   :  { %1566 = vrcp.f32 %v295_v43  ;;  %v307_v49 = vand.u32 2147483648, %v295_v43  ;;  %vm301_vm7 = vweird.f32 %v295_v43  ;;  %v305_v50 = vand.u32 2147483647, %v295_v43 }
 0x30d   :  { %v308_v52 = vor.u32 1.1754944e-38, %v307_v49  ;;  %vm306_vm9 = vcmp.eq.f32.partialorder %v305_v50, 8.507059e+37 }
 0x311   :  { %v1567_v44 = vpop.eup %1566 }
 0x312   :  { %v297_v45 = vmul.f32 %v1567_v44, %v295_v43  ;;  %vm302_vm6 = vweird.f32 %v1567_v44 }
 0x313   :  { %vm303_vm8 = vmor %vm301_vm7, %vm302_vm6 }
 0x314   :  { %v298_v46 = vsub.f32 1.0, %v297_v45 }
 0x316   :  { %v299_v47 = vmul.f32 %v1567_v44, %v298_v46 }
 0x318   :  { %v300_v48 = vadd.f32 %v1567_v44, %v299_v47 }
 0x31a   :  { %v304_v51 = vsel %vm303_vm8, %v1567_v44, %v300_v48 }
 0x31b   :  { %v309_v54 = vsel %vm306_vm9, %v308_v52, %v304_v51 }
 0x31c   :  { %v312_v56 = vmul.f32 %v309_v54, %v251_v30  ;;  %v168_v30 = vpop.f32.mrf.mxu0 }
 0x31d   :  { %v169_v31 = vadd.f32 %v1930_v7, %v168_v30 }
 0x361   :  { %v315_v53 = vpop.permute.xlu2 %314 }
 0x362   :  { %v317_v55 = vmul.f32 %v315_v53, %v309_v54 }
 0x364   :  { %319 = vrot.lane.b32.xlu2 %v317_v55, %s1797_s16 }
 0x3be   :  { %v320_v57 = vpop.permute.xlu2 %319 }
 0x3bf   :  { %v322_v58 = vadd.f32 %v320_v57, %v312_v56  ;;  %v108_v56 = vld [vmem:[%s2165_s0 + $0x20] sm:$0xff] }
 0x3c0   :  { %1495 = vmatmul.msk.f32.gmra.mxu0 %vm117_vm0, %v108_v56 }
 0x3c1   :  { %1568 = vtanh.f32 %v322_v58 }
 0x3c7   :  { %v1569_v59 = vpop.eup %1568 }
 0x3c8   :  { %325 = vrot.lane.b32.xlu0 %v1569_v59, %s1796_s15 }
 0x43a   :  { %v326_v61 = vpop.permute.xlu0 %325 }
 0x43b   :  { %v328_v62 = vmul.f32 %v326_v61, %v309_v54 }
 0x43d   :  { %330 = vrot.lane.b32.xlu1 %v328_v62, %s1797_s16 }
 0x4af   :  { %v331_v63 = vpop.permute.xlu1 %330 }
 0x4b0   :  { %334 = vst.msk [vmem:[#allocation3 + $0x8] sm:$0xff] %vm196_vm5, %v331_v63  ;;  %1502 = vmatmul.msk.f32.vlgmr.msrb.gmra.mxu1 %vm196_vm5, %v331_v63 }
 0x4b1   :  { %643 = vmatpush.msrb.mxu1 %v1878_v0 }
 0x4b3   :  { %644 = vmatpush.msrb.mxu1 %v1883_v1 }
 0x4b5   :  { %645 = vmatpush.msrb.mxu1 %v1895_v4 }
 0x4b7   :  { %646 = vmatpush.msrb.mxu1 %v1904_v5 }
 0x52d   :  { %v360_v8 = vpop.f32.mrf.mxu1 }
 0x52e   :  { %v363_v9 = vadd.f32 %v360_v8, %v166_v3 }
 0x530   :  { %1570 = vtanh.f32 %v363_v9  ;;  %v1503_v11 = vmul.f32 -1.442695, %v363_v9 }
 0x532   :  { %1572 = vpow2.f32 %v1503_v11 }
 0x536   :  { %v1571_v10 = vpop.eup %1570 }
 0x537   :  { %386 = vrot.lane.b32.xlu2 %v1571_v10, %s1796_s15 }
 0x538   :  { %v1573_v12 = vpop.eup %1572 }
 0x539   :  { %v367_v13 = vadd.f32 1.0, %v1573_v12 }
 0x53b   :  { %1574 = vrcp.f32 %v367_v13  ;;  %v379_v5 = vand.u32 2147483648, %v367_v13  ;;  %vm373_vm11 = vweird.f32 %v367_v13  ;;  %v377_v16 = vand.u32 2147483647, %v367_v13 }
 0x53d   :  { %v380_v18 = vor.u32 1.1754944e-38, %v379_v5  ;;  %vm378_vm13 = vcmp.eq.f32.partialorder %v377_v16, 8.507059e+37 }
 0x541   :  { %v1575_v0 = vpop.eup %1574 }
 0x542   :  { %v369_v1 = vmul.f32 %v1575_v0, %v367_v13  ;;  %vm374_vm10 = vweird.f32 %v1575_v0 }
 0x543   :  { %vm375_vm12 = vmor %vm373_vm11, %vm374_vm10 }
 0x544   :  { %v370_v14 = vsub.f32 1.0, %v369_v1 }
 0x546   :  { %v371_v4 = vmul.f32 %v1575_v0, %v370_v14 }
 0x548   :  { %v372_v15 = vadd.f32 %v1575_v0, %v371_v4 }
 0x54a   :  { %v376_v17 = vsel %vm375_vm12, %v1575_v0, %v372_v15 }
 0x54b   :  { %v381_v20 = vsel %vm378_vm13, %v380_v18, %v376_v17 }
 0x54c   :  { %v384_v22 = vmul.f32 %v381_v20, %v322_v58  ;;  %v171_v58 = vpop.f32.mrf.mxu0 }
 0x54d   :  { %v172_v59 = vadd.f32 %v1930_v7, %v171_v58 }
 0x591   :  { %v387_v19 = vpop.permute.xlu2 %386 }
 0x592   :  { %v389_v21 = vmul.f32 %v387_v19, %v381_v20 }
 0x594   :  { %391 = vrot.lane.b32.xlu0 %v389_v21, %s1797_s16 }
 0x606   :  { %v392_v23 = vpop.permute.xlu0 %391 }
 0x607   :  { %v394_v24 = vadd.f32 %v392_v23, %v384_v22  ;;  %v778_v22 = vld [vmem:[%s2169_s4 + $0x18] sm:$0xff]  ;;  %v777_v23 = vld [vmem:[%s2169_s4 + $0x10] sm:$0xff] }
 0x608   :  { %819 = vmatpush.msrb.mxu3 %v778_v22 }
 0x609   :  { %1576 = vtanh.f32 %v394_v24 }
 0x60a   :  { %820 = vmatpush.msrb.mxu3 %v777_v23 }
 0x60f   :  { %v1577_v25 = vpop.eup %1576 }
 0x610   :  { %397 = vrot.lane.b32.xlu1 %v1577_v25, %s1796_s15  ;;  %v776_v25 = vld [vmem:[%s2169_s4 + $0x8] sm:$0xff] }
 0x611   :  { %821 = vmatpush.msrb.mxu3 %v776_v25 }
 0x613   :  { %822 = vmatpush.msrb.mxu3 %v775_v26 }
 0x682   :  { %v398_v27 = vpop.permute.xlu1 %397 }
 0x683   :  { %v400_v28 = vmul.f32 %v398_v27, %v381_v20 }
 0x685   :  { %402 = vrot.lane.b32.xlu2 %v400_v28, %s1797_s16  ;;  %v767_v28 = vld [vmem:[#allocation3] sm:$0xff] }
 0x6df   :  { %v403_v29 = vpop.permute.xlu2 %402 }
 0x6e0   :  { %406 = vst.msk [vmem:[#allocation3 + $0x10] sm:$0xff] %vm196_vm5, %v403_v29  ;;  %1504 = vmatmul.msk.f32.vlgmr.msra.gmra.mxu1 %vm196_vm5, %v403_v29  ;;  %v768_v29 = vld [vmem:[#allocation3 + $0x8] sm:$0xff] }
 0x6e7   :  { %v769_v30 = vld [vmem:[#allocation3 + $0x10] sm:$0xff] }
 0x75d   :  { %v432_v32 = vpop.f32.mrf.mxu1 }
 0x75e   :  { %v435_v33 = vadd.f32 %v432_v32, %v169_v31 }
 0x760   :  { %1578 = vtanh.f32 %v435_v33  ;;  %v1505_v35 = vmul.f32 -1.442695, %v435_v33 }
 0x762   :  { %1580 = vpow2.f32 %v1505_v35 }
 0x766   :  { %v1579_v34 = vpop.eup %1578 }
 0x767   :  { %458 = vrot.lane.b32.xlu0 %v1579_v34, %s1796_s15 }
 0x768   :  { %v1581_v36 = vpop.eup %1580 }
 0x769   :  { %v439_v37 = vadd.f32 1.0, %v1581_v36 }
 0x76b   :  { %1582 = vrcp.f32 %v439_v37  ;;  %v451_v43 = vand.u32 2147483648, %v439_v37  ;;  %vm445_vm15 = vweird.f32 %v439_v37  ;;  %v449_v44 = vand.u32 2147483647, %v439_v37 }
 0x76d   :  { %v452_v46 = vor.u32 1.1754944e-38, %v451_v43  ;;  %vm450_vm2 = vcmp.eq.f32.partialorder %v449_v44, 8.507059e+37 }
 0x771   :  { %v1583_v38 = vpop.eup %1582 }
 0x772   :  { %v441_v39 = vmul.f32 %v1583_v38, %v439_v37  ;;  %vm446_vm14 = vweird.f32 %v1583_v38 }
 0x773   :  { %vm447_vm1 = vmor %vm445_vm15, %vm446_vm14 }
 0x774   :  { %v442_v40 = vsub.f32 1.0, %v441_v39 }
 0x776   :  { %v443_v41 = vmul.f32 %v1583_v38, %v442_v40 }
 0x778   :  { %v444_v42 = vadd.f32 %v1583_v38, %v443_v41 }
 0x77a   :  { %v448_v45 = vsel %vm447_vm1, %v1583_v38, %v444_v42 }
 0x77b   :  { %v453_v48 = vsel %vm450_vm2, %v452_v46, %v448_v45 }
 0x77c   :  { %v456_v50 = vmul.f32 %v453_v48, %v394_v24  ;;  %v109_v24 = vld [vmem:[%s2165_s0 + $0x28] sm:$0xff] }
 0x77d   :  { %1496 = vmatmul.msk.f32.gmra.mxu0 %vm117_vm0, %v109_v24 }
 0x7d9   :  { %v459_v47 = vpop.permute.xlu0 %458 }
 0x7da   :  { %v461_v49 = vmul.f32 %v459_v47, %v453_v48 }
 0x7dc   :  { %463 = vrot.lane.b32.xlu1 %v461_v49, %s1797_s16 }
 0x7fa   :  { %v174_v33 = vpop.f32.mrf.mxu0 }
 0x7fb   :  { %v175_v34 = vadd.f32 %v1930_v7, %v174_v33 }
 0x84e   :  { %v464_v51 = vpop.permute.xlu1 %463 }
 0x84f   :  { %v466_v52 = vadd.f32 %v464_v51, %v456_v50 }
 0x851   :  { %1584 = vtanh.f32 %v466_v52 }
 0x857   :  { %v1585_v53 = vpop.eup %1584 }
 0x858   :  { %469 = vrot.lane.b32.xlu2 %v1585_v53, %s1796_s15 }
 0x8b2   :  { %v470_v54 = vpop.permute.xlu2 %469 }
 0x8b3   :  { %v472_v55 = vmul.f32 %v470_v54, %v453_v48 }
 0x8b5   :  { %474 = vrot.lane.b32.xlu0 %v472_v55, %s1797_s16 }
 0x927   :  { %v475_v57 = vpop.permute.xlu0 %474 }
 0x928   :  { %478 = vst.msk [vmem:[#allocation3 + $0x18] sm:$0xff] %vm196_vm5, %v475_v57  ;;  %1506 = vmatmul.msk.f32.vlgmr.msrb.gmra.mxu2 %vm196_vm5, %v475_v57  ;;  %v110_v57 = vld [vmem:[%s2165_s0 + $0x30] sm:$0xff] }
 0x929   :  { %1497 = vmatmul.msk.f32.gmra.mxu0 %vm117_vm0, %v110_v57 }
 0x92f   :  { %v770_v31 = vld [vmem:[#allocation3 + $0x18] sm:$0xff] }
 0x9ab   :  { %v504_v60 = vpop.f32.mrf.mxu2 }
 0x9ac   :  { %v507_v61 = vadd.f32 %v504_v60, %v172_v59  ;;  %v2024_v60 = vld [vmem:[#allocation4 + $0x18] sm:$0xff] }
 0x9ad   :  { %873 = vmatpush.msra.mxu1 %v2024_v60  ;;  %937 = vmatpush.msrb.mxu2 %v2024_v60 }
 0x9ae   :  { %1586 = vtanh.f32 %v507_v61  ;;  %v1507_v63 = vmul.f32 -1.442695, %v507_v61  ;;  %v2026_v61 = vld [vmem:[#allocation4 + $0x10] sm:$0xff] }
 0x9af   :  { %874 = vmatpush.msra.mxu1 %v2026_v61  ;;  %938 = vmatpush.msrb.mxu2 %v2026_v61 }
 0x9b0   :  { %1588 = vpow2.f32 %v1507_v63  ;;  %v2034_v63 = vld [vmem:[#allocation4] sm:$0xff] }
 0x9b4   :  { %v1587_v62 = vpop.eup %1586 }
 0x9b5   :  { %530 = vrot.lane.b32.xlu1 %v1587_v62, %s1796_s15  ;;  %v2030_v62 = vld [vmem:[#allocation4 + $0x8] sm:$0xff] }
 0x9b6   :  { %v1589_v2 = vpop.eup %1588  ;;  %875 = vmatpush.msra.mxu1 %v2030_v62  ;;  %939 = vmatpush.msrb.mxu2 %v2030_v62 }
 0x9b7   :  { %v511_v3 = vadd.f32 1.0, %v1589_v2 }
 0x9b8   :  { %876 = vmatpush.msra.mxu1 %v2034_v63  ;;  %940 = vmatpush.msrb.mxu2 %v2034_v63 }
 0x9b9   :  { %1590 = vrcp.f32 %v511_v3  ;;  %v523_v13 = vand.u32 2147483648, %v511_v3  ;;  %vm517_vm4 = vweird.f32 %v511_v3  ;;  %v521_v0 = vand.u32 2147483647, %v511_v3 }
 0x9bb   :  { %v524_v14 = vor.u32 1.1754944e-38, %v523_v13  ;;  %vm522_vm7 = vcmp.eq.f32.partialorder %v521_v0, 8.507059e+37 }
 0x9bf   :  { %v1591_v8 = vpop.eup %1590 }
 0x9c0   :  { %v513_v9 = vmul.f32 %v1591_v8, %v511_v3  ;;  %vm518_vm3 = vweird.f32 %v1591_v8 }
 0x9c1   :  { %vm519_vm6 = vmor %vm517_vm4, %vm518_vm3 }
 0x9c2   :  { %v514_v10 = vsub.f32 1.0, %v513_v9 }
 0x9c4   :  { %v515_v11 = vmul.f32 %v1591_v8, %v514_v10 }
 0x9c6   :  { %v516_v12 = vadd.f32 %v1591_v8, %v515_v11 }
 0x9c8   :  { %v520_v1 = vsel %vm519_vm6, %v1591_v8, %v516_v12  ;;  %v177_v8 = vpop.f32.mrf.mxu0  ;;  %v2056_v12 = vld [vmem:[%s2171_s6] ss:$0 sm:$0xff] }
 0x9c9   :  { %v525_v15 = vsel %vm522_vm7, %v524_v14, %v520_v1  ;;  %v178_v9 = vadd.f32 %v1930_v7, %v177_v8 }
 0x9ca   :  { %v528_v16 = vmul.f32 %v525_v15, %v466_v52 }
 0xa27   :  { %v531_v4 = vpop.permute.xlu1 %530 }
 0xa28   :  { %v533_v5 = vmul.f32 %v531_v4, %v525_v15 }
 0xa2a   :  { %535 = vrot.lane.b32.xlu2 %v533_v5, %s1797_s16 }
 0xa84   :  { %v536_v17 = vpop.permute.xlu2 %535 }
 0xa85   :  { %v538_v18 = vadd.f32 %v536_v17, %v528_v16 }
 0xa87   :  { %1592 = vtanh.f32 %v538_v18 }
 0xa8d   :  { %v1593_v19 = vpop.eup %1592 }
 0xa8e   :  { %541 = vrot.lane.b32.xlu0 %v1593_v19, %s1796_s15 }
 0xb00   :  { %v542_v20 = vpop.permute.xlu0 %541 }
 0xb01   :  { %v544_v21 = vmul.f32 %v542_v20, %v525_v15 }
 0xb03   :  { %546 = vrot.lane.b32.xlu1 %v544_v21, %s1797_s16 }
 0xb75   :  { %v547_v27 = vpop.permute.xlu1 %546 }
 0xb76   :  { %550 = vst.msk [vmem:[#allocation3 + $0x20] sm:$0xff] %vm196_vm5, %v547_v27  ;;  %1508 = vmatmul.msk.f32.vlgmr.msra.gmra.mxu3 %vm196_vm5, %v547_v27 }
 0xb7d   :  { %v771_v32 = vld [vmem:[#allocation3 + $0x20] sm:$0xff] }
 0xb7e   :  { %1514 = vmatmul.msk.f32.vlgmr.msrb.gmra.mxu3 %vm196_vm5, %v767_v28 }
 0xb86   :  { %1515 = vmatmul.msk.f32.gmra.mxu3 %vm196_vm5, %v768_v29 }
 0xb8e   :  { %1516 = vmatmul.msk.f32.gmra.mxu3 %vm196_vm5, %v769_v30 }
 0xb96   :  { %1517 = vmatmul.msk.f32.gmra.mxu3 %vm196_vm5, %v770_v31 }
 0xb9e   :  { %1518 = vmatmul.msk.f32.gmra.mxu3 %vm196_vm5, %v771_v32 }
 0xbf9   :  { %v576_v35 = vpop.f32.mrf.mxu3 }
 0xbfa   :  { %v579_v36 = vadd.f32 %v576_v35, %v175_v34 }
 0xbfc   :  { %1594 = vtanh.f32 %v579_v36  ;;  %v1509_v38 = vmul.f32 -1.442695, %v579_v36 }
 0xbfe   :  { %1596 = vpow2.f32 %v1509_v38 }
 0xc02   :  { %v1595_v37 = vpop.eup %1594 }
 0xc03   :  { %602 = vrot.lane.b32.xlu2 %v1595_v37, %s1796_s15 }
 0xc04   :  { %v1597_v39 = vpop.eup %1596 }
 0xc05   :  { %v583_v40 = vadd.f32 1.0, %v1597_v39 }
 0xc07   :  { %1598 = vrcp.f32 %v583_v40  ;;  %v595_v46 = vand.u32 2147483648, %v583_v40  ;;  %vm589_vm9 = vweird.f32 %v583_v40  ;;  %v593_v47 = vand.u32 2147483647, %v583_v40 }
 0xc09   :  { %v596_v49 = vor.u32 1.1754944e-38, %v595_v46  ;;  %vm594_vm11 = vcmp.eq.f32.partialorder %v593_v47, 8.507059e+37 }
 0xc0d   :  { %v1599_v41 = vpop.eup %1598 }
 0xc0e   :  { %v585_v42 = vmul.f32 %v1599_v41, %v583_v40  ;;  %vm590_vm8 = vweird.f32 %v1599_v41 }
 0xc0f   :  { %vm591_vm10 = vmor %vm589_vm9, %vm590_vm8 }
 0xc10   :  { %v586_v43 = vsub.f32 1.0, %v585_v42 }
 0xc12   :  { %v587_v44 = vmul.f32 %v1599_v41, %v586_v43 }
 0xc14   :  { %v588_v45 = vadd.f32 %v1599_v41, %v587_v44 }
 0xc16   :  { %v592_v48 = vsel %vm591_vm10, %v1599_v41, %v588_v45 }
 0xc17   :  { %v597_v51 = vsel %vm594_vm11, %v596_v49, %v592_v48 }
 0xc18   :  { %v600_v53 = vmul.f32 %v597_v51, %v538_v18 }
 0xc5d   :  { %v603_v50 = vpop.permute.xlu2 %602 }
 0xc5e   :  { %v605_v52 = vmul.f32 %v603_v50, %v597_v51 }
 0xc60   :  { %607 = vrot.lane.b32.xlu0 %v605_v52, %s1797_s16 }
 0xcd2   :  { %v608_v54 = vpop.permute.xlu0 %607 }
 0xcd3   :  { %v2015_v55 = vadd.f32 %v608_v54, %v600_v53 }
 0xcd5   :  { %1600 = vtanh.f32 %v2015_v55 }
 0xcdb   :  { %v1601_v56 = vpop.eup %1600 }
 0xcdc   :  { %613 = vrot.lane.b32.xlu1 %v1601_v56, %s1796_s15 }
 0xd4e   :  { %v614_v58 = vpop.permute.xlu1 %613 }
 0xd4f   :  { %v616_v59 = vmul.f32 %v614_v58, %v597_v51 }
 0xd51   :  { %618 = vrot.lane.b32.xlu2 %v616_v59, %s1797_s16 }
 0xdab   :  { %v619_v2 = vpop.permute.xlu2 %618 }
 0xdac   :  { %622 = vst.msk [vmem:[#allocation3 + $0x28] sm:$0xff] %vm196_vm5, %v619_v2  ;;  %1510 = vmatmul.msk.f32.vlgmr.msrb.gmra.mxu1 %vm196_vm5, %v619_v2 }
 0xdad   :  { %1001 = vmatpush.msrb.mxu1 %v2024_v60 }
 0xdaf   :  { %1002 = vmatpush.msrb.mxu1 %v2026_v61 }
 0xdb1   :  { %1003 = vmatpush.msrb.mxu1 %v2030_v62 }
 0xdb3   :  { %v772_v3 = vld [vmem:[#allocation3 + $0x28] sm:$0xff]  ;;  %1004 = vmatpush.msrb.mxu1 %v2034_v63 }
 0xdb4   :  { %1519 = vmatmul.msk.f32.gmra.mxu3 %vm196_vm5, %v772_v3  ;;  %877 = vmatmul.f32.vlgmr.msra.gmra.mxu1 %v1795_v6  ;;  %v824_v6 = vpop.f32.mrf.mxu3 }
 0xdb5   :  { %1129 = vmatpush.msra.mxu1 %v2024_v60  ;;  %v825_v13 = vadd.f32 %v2056_v12, %v824_v6 }
 0xdb7   :  { %1130 = vmatpush.msra.mxu1 %v2026_v61 }
 0xdb9   :  { %1131 = vmatpush.msra.mxu1 %v2030_v62 }
 0xdbb   :  { %1132 = vmatpush.msra.mxu1 %v2034_v63 }
 0xdbc   :  { %v827_v2 = vpop.f32.mrf.mxu3 }
 0xdbd   :  { %v828_v3 = vadd.f32 %v2056_v12, %v827_v2 }
 0xe29   :  { %v648_v10 = vpop.f32.mrf.mxu1 }
 0xe2a   :  { %v651_v11 = vadd.f32 %v648_v10, %v178_v9 }
 0xe2c   :  { %1602 = vtanh.f32 %v651_v11  ;;  %v1511_v7 = vmul.f32 -1.442695, %v651_v11 }
 0xe31   :  { %v878_v0 = vpop.f32.mrf.mxu1 }
 0xe32   :  { %v1603_v1 = vpop.eup %1602  ;;  %v881_v14 = vadd.f32 %v878_v0, %v825_v13 }
 0xe33   :  { %674 = vrot.lane.b32.xlu0 %v1603_v1, %s1796_s15 }
 0xe34   :  { %1604 = vtanh.f32 %v881_v14  ;;  %v1522_v15 = vmul.f32 -1.442695, %v881_v14 }
 0xe35   :  { %1606 = vpow2.f32 %v1511_v7 }
 0xe36   :  { %1608 = vpow2.f32 %v1522_v15 }
 0xe3a   :  { %v1605_v4 = vpop.eup %1604 }
 0xe3b   :  { %904 = vrot.lane.b32.xlu1 %v1605_v4, %s1796_s15  ;;  %v1607_v5 = vpop.eup %1606 }
 0xe3c   :  { %v655_v16 = vadd.f32 1.0, %v1607_v5  ;;  %v1609_v17 = vpop.eup %1608 }
 0xe3d   :  { %v885_v18 = vadd.f32 1.0, %v1609_v17 }
 0xe3e   :  { %1610 = vrcp.f32 %v655_v16  ;;  %v667_v27 = vand.u32 2147483648, %v655_v16  ;;  %vm661_vm13 = vweird.f32 %v655_v16  ;;  %v665_v28 = vand.u32 2147483647, %v655_v16 }
 0xe3f   :  { %1612 = vrcp.f32 %v885_v18  ;;  %v897_v36 = vand.u32 2147483648, %v885_v18  ;;  %vm891_vm2 = vweird.f32 %v885_v18  ;;  %v895_v37 = vand.u32 2147483647, %v885_v18 }
 0xe40   :  { %v668_v31 = vor.u32 1.1754944e-38, %v667_v27  ;;  %vm666_vm15 = vcmp.eq.f32.partialorder %v665_v28, 8.507059e+37  ;;  %v830_v28 = vpop.f32.mrf.mxu3 }
 0xe41   :  { %v898_v39 = vor.u32 1.1754944e-38, %v897_v36  ;;  %vm896_vm4 = vcmp.eq.f32.partialorder %v895_v37, 8.507059e+37 }
 0xe44   :  { %v1611_v19 = vpop.eup %1610 }
 0xe45   :  { %v657_v20 = vmul.f32 %v1611_v19, %v655_v16  ;;  %v1613_v22 = vpop.eup %1612  ;;  %vm662_vm12 = vweird.f32 %v1611_v19 }
 0xe46   :  { %v887_v24 = vmul.f32 %v1613_v22, %v885_v18  ;;  %vm663_vm14 = vmor %vm661_vm13, %vm662_vm12  ;;  %vm892_vm1 = vweird.f32 %v1613_v22 }
 0xe47   :  { %v658_v21 = vsub.f32 1.0, %v657_v20  ;;  %vm893_vm3 = vmor %vm891_vm2, %vm892_vm1 }
 0xe48   :  { %v888_v26 = vsub.f32 1.0, %v887_v24 }
 0xe49   :  { %v659_v23 = vmul.f32 %v1611_v19, %v658_v21 }
 0xe4a   :  { %v889_v30 = vmul.f32 %v1613_v22, %v888_v26 }
 0xe4b   :  { %v660_v25 = vadd.f32 %v1611_v19, %v659_v23 }
 0xe4c   :  { %v890_v35 = vadd.f32 %v1613_v22, %v889_v30 }
 0xe4d   :  { %v664_v29 = vsel %vm663_vm14, %v1611_v19, %v660_v25 }
 0xe4e   :  { %v669_v33 = vsel %vm666_vm15, %v668_v31, %v664_v29  ;;  %v894_v38 = vsel %vm893_vm3, %v1613_v22, %v890_v35  ;;  %v831_v29 = vadd.f32 %v2056_v12, %v830_v28 }
 0xe4f   :  { %v899_v41 = vsel %vm896_vm4, %v898_v39, %v894_v38  ;;  %v672_v43 = vmul.f32 %v669_v33, %v2015_v55  ;;  %v111_v55 = vld [vmem:[%s2165_s0 + $0x38] sm:$0xff] }
 0xe50   :  { %v902_v47 = vmul.f32 0.0, %v899_v41  ;;  %1498 = vmatmul.msk.f32.gmra.mxu0 %vm117_vm0, %v111_v55 }
 0xea5   :  { %v675_v32 = vpop.permute.xlu0 %674 }
 0xea6   :  { %v677_v34 = vmul.f32 %v675_v32, %v669_v33 }
 0xea8   :  { %679 = vrot.lane.b32.xlu2 %v677_v34, %s1797_s16 }
 0xead   :  { %v905_v40 = vpop.permute.xlu1 %904 }
 0xeae   :  { %v907_v42 = vmul.f32 %v905_v40, %v899_v41 }
 0xeb0   :  { %909 = vrot.lane.b32.xlu0 %v907_v42, %s1797_s16 }
 0xf02   :  { %v680_v44 = vpop.permute.xlu2 %679 }
 0xf03   :  { %v2064_v45 = vadd.f32 %v680_v44, %v672_v43 }
 0xf05   :  { %1614 = vtanh.f32 %v2064_v45 }
 0xf0b   :  { %v1615_v46 = vpop.eup %1614 }
 0xf0c   :  { %685 = vrot.lane.b32.xlu1 %v1615_v46, %s1796_s15 }
 0xf22   :  { %v910_v48 = vpop.permute.xlu0 %909 }
 0xf23   :  { %v912_v49 = vadd.f32 %v910_v48, %v902_v47 }
 0xf25   :  { %1616 = vtanh.f32 %v912_v49 }
 0xf2b   :  { %v1617_v50 = vpop.eup %1616 }
 0xf2c   :  { %915 = vrot.lane.b32.xlu2 %v1617_v50, %s1796_s15 }
 0xf7e   :  { %v686_v51 = vpop.permute.xlu1 %685 }
 0xf7f   :  { %v688_v52 = vmul.f32 %v686_v51, %v669_v33 }
 0xf81   :  { %690 = vrot.lane.b32.xlu0 %v688_v52, %s1797_s16 }
 0xf86   :  { %v916_v53 = vpop.permute.xlu2 %915 }
 0xf87   :  { %v918_v54 = vmul.f32 %v916_v53, %v899_v41 }
 0xf89   :  { %921 = vrot.lane.b32.xlu1 %v918_v54, %s1797_s16 }
 0xff3   :  { %v691_v56 = vpop.permute.xlu0 %690 }
 0xff4   :  { %694 = vst.msk [vmem:[#allocation3 + $0x30] sm:$0xff] %vm196_vm5, %v691_v56  ;;  %1512 = vmatmul.msk.f32.vlgmr.msra.gmra.mxu2 %vm196_vm5, %v691_v56  ;;  %v833_v56 = vpop.f32.mrf.mxu3 }
 0xff5   :  { %1065 = vmatpush.msra.mxu2 %v2024_v60 }
 0xff7   :  { %1066 = vmatpush.msra.mxu2 %v2026_v61 }
 0xff9   :  { %1067 = vmatpush.msra.mxu2 %v2030_v62 }
 0xffb   :  { %v922_v57 = vpop.permute.xlu1 %921  ;;  %v773_v58 = vld [vmem:[#allocation3 + $0x30] sm:$0xff]  ;;  %1068 = vmatpush.msra.mxu2 %v2034_v63 }
 0xffc   :  { %1520 = vmatmul.msk.f32.gmra.mxu3 %vm196_vm5, %v773_v58  ;;  %1523 = vmatmul.msk.f32.vlgmr.msrb.gmra.mxu2 %vm196_vm5, %v922_v57  ;;  %v834_v57 = vadd.f32 %v2056_v12, %v833_v56 }
 0xffd   :  { %1193 = vmatpush.msrb.mxu2 %v2024_v60 }
 0xfff   :  { %1194 = vmatpush.msrb.mxu2 %v2026_v61 }
0x1001   :  { %1195 = vmatpush.msrb.mxu2 %v2030_v62 }
0x1003   :  { %1196 = vmatpush.msrb.mxu2 %v2034_v63 }
0x1077   :  { %v2087_v59 = vpop.f32.mrf.mxu2 }
0x107f   :  { %v942_v8 = vpop.f32.mrf.mxu2 }
0x1080   :  { %v945_v9 = vadd.f32 %v942_v8, %v828_v3 }
0x1082   :  { %1618 = vtanh.f32 %v945_v9  ;;  %v1524_v11 = vmul.f32 -1.442695, %v945_v9 }
0x1084   :  { %1620 = vpow2.f32 %v1524_v11 }
0x1088   :  { %v1619_v10 = vpop.eup %1618 }
0x1089   :  { %968 = vrot.lane.b32.xlu2 %v1619_v10, %s1796_s15 }
0x108a   :  { %v1621_v6 = vpop.eup %1620 }
0x108b   :  { %v949_v13 = vadd.f32 1.0, %v1621_v6 }
0x108d   :  { %1622 = vrcp.f32 %v949_v13  ;;  %v961_v15 = vand.u32 2147483648, %v949_v13  ;;  %vm955_vm6 = vweird.f32 %v949_v13  ;;  %v959_v5 = vand.u32 2147483647, %v949_v13 }
0x108f   :  { %v962_v17 = vor.u32 1.1754944e-38, %v961_v15  ;;  %vm960_vm8 = vcmp.eq.f32.partialorder %v959_v5, 8.507059e+37 }
0x1093   :  { %v1623_v0 = vpop.eup %1622 }
0x1094   :  { %v951_v1 = vmul.f32 %v1623_v0, %v949_v13  ;;  %vm956_vm0 = vweird.f32 %v1623_v0 }
0x1095   :  { %vm957_vm7 = vmor %vm955_vm6, %vm956_vm0 }
0x1096   :  { %v952_v14 = vsub.f32 1.0, %v951_v1 }
0x1098   :  { %v953_v4 = vmul.f32 %v1623_v0, %v952_v14 }
0x109a   :  { %v954_v7 = vadd.f32 %v1623_v0, %v953_v4 }
0x109c   :  { %v958_v16 = vsel %vm957_vm7, %v1623_v0, %v954_v7 }
0x109d   :  { %v963_v19 = vsel %vm960_vm8, %v962_v17, %v958_v16 }
0x109e   :  { %v966_v21 = vmul.f32 %v963_v19, %v912_v49 }
0x10e3   :  { %v969_v18 = vpop.permute.xlu2 %968 }
0x10e4   :  { %v971_v20 = vmul.f32 %v969_v18, %v963_v19 }
0x10e6   :  { %973 = vrot.lane.b32.xlu0 %v971_v20, %s1797_s16 }
0x1158   :  { %v974_v22 = vpop.permute.xlu0 %973 }
0x1159   :  { %v976_v23 = vadd.f32 %v974_v22, %v966_v21  ;;  %v836_v21 = vpop.f32.mrf.mxu3 }
0x115a   :  { %v837_v22 = vadd.f32 %v2056_v12, %v836_v21 }
0x115b   :  { %1624 = vtanh.f32 %v976_v23 }
0x1161   :  { %v1625_v24 = vpop.eup %1624 }
0x1162   :  { %979 = vrot.lane.b32.xlu1 %v1625_v24, %s1796_s15 }
0x11d4   :  { %v980_v25 = vpop.permute.xlu1 %979 }
0x11d5   :  { %v982_v26 = vmul.f32 %v980_v25, %v963_v19 }
0x11d7   :  { %985 = vrot.lane.b32.xlu2 %v982_v26, %s1797_s16 }
0x1231   :  { %v986_v27 = vpop.permute.xlu2 %985 }
0x1232   :  { %1525 = vmatmul.msk.f32.vlgmr.msrb.gmra.mxu1 %vm196_vm5, %v986_v27 }
0x1233   :  { %1257 = vmatpush.msrb.mxu1 %v2024_v60 }
0x1235   :  { %1258 = vmatpush.msrb.mxu1 %v2026_v61 }
0x1237   :  { %1259 = vmatpush.msrb.mxu1 %v2030_v62 }
0x1239   :  { %1260 = vmatpush.msrb.mxu1 %v2034_v63 }
0x12af   :  { %v1006_v30 = vpop.f32.mrf.mxu1 }
0x12b0   :  { %v1009_v31 = vadd.f32 %v1006_v30, %v831_v29 }
0x12b2   :  { %1626 = vtanh.f32 %v1009_v31  ;;  %v1526_v33 = vmul.f32 -1.442695, %v1009_v31 }
0x12b4   :  { %1628 = vpow2.f32 %v1526_v33 }
0x12b8   :  { %v1627_v32 = vpop.eup %1626 }
0x12b9   :  { %1032 = vrot.lane.b32.xlu0 %v1627_v32, %s1796_s15 }
0x12ba   :  { %v1629_v34 = vpop.eup %1628 }
0x12bb   :  { %v1013_v35 = vadd.f32 1.0, %v1629_v34 }
0x12bd   :  { %1630 = vrcp.f32 %v1013_v35  ;;  %v1025_v41 = vand.u32 2147483648, %v1013_v35  ;;  %vm1019_vm10 = vweird.f32 %v1013_v35  ;;  %v1023_v42 = vand.u32 2147483647, %v1013_v35 }
0x12bf   :  { %v1026_v44 = vor.u32 1.1754944e-38, %v1025_v41  ;;  %vm1024_vm12 = vcmp.eq.f32.partialorder %v1023_v42, 8.507059e+37 }
0x12c3   :  { %v1631_v36 = vpop.eup %1630 }
0x12c4   :  { %v1015_v37 = vmul.f32 %v1631_v36, %v1013_v35  ;;  %vm1020_vm9 = vweird.f32 %v1631_v36 }
0x12c5   :  { %vm1021_vm11 = vmor %vm1019_vm10, %vm1020_vm9 }
0x12c6   :  { %v1016_v38 = vsub.f32 1.0, %v1015_v37 }
0x12c8   :  { %v1017_v39 = vmul.f32 %v1631_v36, %v1016_v38 }
0x12ca   :  { %v1018_v40 = vadd.f32 %v1631_v36, %v1017_v39 }
0x12cc   :  { %v1022_v43 = vsel %vm1021_vm11, %v1631_v36, %v1018_v40 }
0x12cd   :  { %v1027_v47 = vsel %vm1024_vm12, %v1026_v44, %v1022_v43 }
0x12ce   :  { %v1030_v49 = vmul.f32 %v1027_v47, %v976_v23 }
0x132b   :  { %v1033_v46 = vpop.permute.xlu0 %1032 }
0x132c   :  { %v1035_v48 = vmul.f32 %v1033_v46, %v1027_v47 }
0x132e   :  { %1037 = vrot.lane.b32.xlu1 %v1035_v48, %s1797_s16 }
0x13a0   :  { %v1038_v50 = vpop.permute.xlu1 %1037 }
0x13a1   :  { %v1040_v51 = vadd.f32 %v1038_v50, %v1030_v49  ;;  %v839_v49 = vpop.f32.mrf.mxu3 }
0x13a2   :  { %v840_v50 = vadd.f32 %v2056_v12, %v839_v49 }
0x13a3   :  { %1632 = vtanh.f32 %v1040_v51 }
0x13a9   :  { %v1633_v52 = vpop.eup %1632 }
0x13aa   :  { %1043 = vrot.lane.b32.xlu2 %v1633_v52, %s1796_s15 }
0x1404   :  { %v1044_v53 = vpop.permute.xlu2 %1043 }
0x1405   :  { %v1046_v54 = vmul.f32 %v1044_v53, %v1027_v47 }
0x1407   :  { %1049 = vrot.lane.b32.xlu0 %v1046_v54, %s1797_s16 }
0x1479   :  { %v1050_v55 = vpop.permute.xlu0 %1049 }
0x147a   :  { %1527 = vmatmul.msk.f32.vlgmr.msra.gmra.mxu2 %vm196_vm5, %v1050_v55 }
0x147b   :  { %1321 = vmatpush.msra.mxu2 %v2024_v60 }
0x147d   :  { %1322 = vmatpush.msra.mxu2 %v2026_v61 }
0x147f   :  { %1323 = vmatpush.msra.mxu2 %v2030_v62 }
0x1481   :  { %1324 = vmatpush.msra.mxu2 %v2034_v63 }
0x14fd   :  { %v1070_v58 = vpop.f32.mrf.mxu2 }
0x14fe   :  { %v1073_v2 = vadd.f32 %v1070_v58, %v834_v57 }
0x1500   :  { %1634 = vtanh.f32 %v1073_v2  ;;  %v1528_v8 = vmul.f32 -1.442695, %v1073_v2 }
0x1502   :  { %1636 = vpow2.f32 %v1528_v8  ;;  %v180_v8 = vpop.f32.mrf.mxu0 }
0x1506   :  { %v1635_v3 = vpop.eup %1634 }
0x1507   :  { %1096 = vrot.lane.b32.xlu1 %v1635_v3, %s1796_s15 }
0x1508   :  { %v1637_v9 = vpop.eup %1636 }
0x1509   :  { %v1077_v10 = vadd.f32 1.0, %v1637_v9 }
0x150b   :  { %1638 = vrcp.f32 %v1077_v10  ;;  %v1089_v63 = vand.u32 2147483648, %v1077_v10  ;;  %vm1083_vm14 = vweird.f32 %v1077_v10  ;;  %v1087_v13 = vand.u32 2147483647, %v1077_v10 }
0x150d   :  { %v1090_v1 = vor.u32 1.1754944e-38, %v1089_v63  ;;  %vm1088_vm1 = vcmp.eq.f32.partialorder %v1087_v13, 8.507059e+37 }
0x1511   :  { %v1639_v60 = vpop.eup %1638 }
0x1512   :  { %v1079_v61 = vmul.f32 %v1639_v60, %v1077_v10  ;;  %vm1084_vm13 = vweird.f32 %v1639_v60 }
0x1513   :  { %vm1085_vm15 = vmor %vm1083_vm14, %vm1084_vm13 }
0x1514   :  { %v1080_v11 = vsub.f32 1.0, %v1079_v61  ;;  %v1686_v61 = vld [vmem:[%s2168_s3] ss:$0 sm:$0xff] }
0x1516   :  { %v1081_v62 = vmul.f32 %v1639_v60, %v1080_v11  ;;  %v181_v11 = vadd.f32 %v1686_v61, %v180_v8 }
0x1518   :  { %v1082_v6 = vadd.f32 %v1639_v60, %v1081_v62  ;;  %v723_v63 = vadd.f32 %v2087_v59, %v181_v11 }
0x151a   :  { %v1086_v0 = vsel %vm1085_vm15, %v1639_v60, %v1082_v6 }
0x151b   :  { %v1091_v4 = vsel %vm1088_vm1, %v1090_v1, %v1086_v0 }
0x151c   :  { %v1094_v15 = vmul.f32 %v1091_v4, %v1040_v51 }
0x1579   :  { %v1097_v14 = vpop.permute.xlu1 %1096 }
0x157a   :  { %v1099_v7 = vmul.f32 %v1097_v14, %v1091_v4 }
0x157c   :  { %1101 = vrot.lane.b32.xlu2 %v1099_v7, %s1797_s16 }
0x15d6   :  { %v1102_v5 = vpop.permute.xlu2 %1101 }
0x15d7   :  { %v1104_v16 = vadd.f32 %v1102_v5, %v1094_v15 }
0x15d9   :  { %1640 = vtanh.f32 %v1104_v16 }
0x15df   :  { %v1641_v17 = vpop.eup %1640 }
0x15e0   :  { %1107 = vrot.lane.b32.xlu0 %v1641_v17, %s1796_s15 }
0x1652   :  { %v1108_v18 = vpop.permute.xlu0 %1107 }
0x1653   :  { %v1110_v19 = vmul.f32 %v1108_v18, %v1091_v4 }
0x1655   :  { %1113 = vrot.lane.b32.xlu1 %v1110_v19, %s1797_s16 }
0x16c7   :  { %v1114_v20 = vpop.permute.xlu1 %1113 }
0x16c8   :  { %1529 = vmatmul.msk.f32.vlgmr.msra.gmra.mxu1 %vm196_vm5, %v1114_v20 }
0x1745   :  { %v1134_v23 = vpop.f32.mrf.mxu1 }
0x1746   :  { %v1137_v24 = vadd.f32 %v1134_v23, %v837_v22 }
0x1748   :  { %1642 = vtanh.f32 %v1137_v24  ;;  %v1530_v26 = vmul.f32 -1.442695, %v1137_v24 }
0x174a   :  { %1644 = vpow2.f32 %v1530_v26 }
0x174e   :  { %v1643_v25 = vpop.eup %1642 }
0x174f   :  { %1160 = vrot.lane.b32.xlu2 %v1643_v25, %s1796_s15 }
0x1750   :  { %v1645_v27 = vpop.eup %1644 }
0x1751   :  { %v1141_v28 = vadd.f32 1.0, %v1645_v27 }
0x1753   :  { %1646 = vrcp.f32 %v1141_v28  ;;  %v1153_v34 = vand.u32 2147483648, %v1141_v28  ;;  %vm1147_vm3 = vweird.f32 %v1141_v28  ;;  %v1151_v35 = vand.u32 2147483647, %v1141_v28 }
0x1755   :  { %v1154_v37 = vor.u32 1.1754944e-38, %v1153_v34  ;;  %vm1152_vm0 = vcmp.eq.f32.partialorder %v1151_v35, 8.507059e+37 }
0x1759   :  { %v1647_v29 = vpop.eup %1646 }
0x175a   :  { %v1143_v30 = vmul.f32 %v1647_v29, %v1141_v28  ;;  %vm1148_vm2 = vweird.f32 %v1647_v29 }
0x175b   :  { %vm1149_vm4 = vmor %vm1147_vm3, %vm1148_vm2 }
0x175c   :  { %v1144_v31 = vsub.f32 1.0, %v1143_v30 }
0x175e   :  { %v1145_v32 = vmul.f32 %v1647_v29, %v1144_v31 }
0x1760   :  { %v1146_v33 = vadd.f32 %v1647_v29, %v1145_v32 }
0x1762   :  { %v1150_v36 = vsel %vm1149_vm4, %v1647_v29, %v1146_v33  ;;  %v842_v33 = vpop.f32.mrf.mxu3 }
0x1763   :  { %v1155_v39 = vsel %vm1152_vm0, %v1154_v37, %v1150_v36  ;;  %v843_v34 = vadd.f32 %v2056_v12, %v842_v33 }
0x1764   :  { %v1158_v41 = vmul.f32 %v1155_v39, %v1104_v16  ;;  %v1513_v16 = vmul.f32 -1.442695, %v723_v63 }
0x17a9   :  { %v1161_v38 = vpop.permute.xlu2 %1160 }
0x17aa   :  { %v1163_v40 = vmul.f32 %v1161_v38, %v1155_v39 }
0x17ac   :  { %1165 = vrot.lane.b32.xlu0 %v1163_v40, %s1797_s16 }
0x181e   :  { %v1166_v42 = vpop.permute.xlu0 %1165 }
0x181f   :  { %v1168_v43 = vadd.f32 %v1166_v42, %v1158_v41 }
0x1821   :  { %1648 = vtanh.f32 %v1168_v43 }
0x1827   :  { %v1649_v44 = vpop.eup %1648 }
0x1828   :  { %1171 = vrot.lane.b32.xlu1 %v1649_v44, %s1796_s15 }
0x189a   :  { %v1172_v46 = vpop.permute.xlu1 %1171 }
0x189b   :  { %v1174_v47 = vmul.f32 %v1172_v46, %v1155_v39 }
0x189d   :  { %1177 = vrot.lane.b32.xlu2 %v1174_v47, %s1797_s16 }
0x18f7   :  { %v1178_v48 = vpop.permute.xlu2 %1177 }
0x18f8   :  { %1531 = vmatmul.msk.f32.vlgmr.msrb.gmra.mxu2 %vm196_vm5, %v1178_v48 }
0x197b   :  { %v1198_v51 = vpop.f32.mrf.mxu2 }
0x197c   :  { %v1201_v52 = vadd.f32 %v1198_v51, %v840_v50 }
0x197e   :  { %1650 = vtanh.f32 %v1201_v52  ;;  %v1532_v54 = vmul.f32 -1.442695, %v1201_v52 }
0x1980   :  { %1652 = vpow2.f32 %v1532_v54 }
0x1984   :  { %v1651_v53 = vpop.eup %1650 }
0x1985   :  { %1224 = vrot.lane.b32.xlu0 %v1651_v53, %s1796_s15 }
0x1986   :  { %v1653_v55 = vpop.eup %1652 }
0x1987   :  { %v1205_v56 = vadd.f32 1.0, %v1653_v55 }
0x1989   :  { %1654 = vrcp.f32 %v1205_v56  ;;  %v1217_v10 = vand.u32 2147483648, %v1205_v56  ;;  %vm1211_vm7 = vweird.f32 %v1205_v56  ;;  %v1215_v60 = vand.u32 2147483647, %v1205_v56 }
0x198a   :  { %1656 = vtanh.f32 %v723_v63 }
0x198b   :  { %v1218_v6 = vor.u32 1.1754944e-38, %v1217_v10  ;;  %vm1216_vm9 = vcmp.eq.f32.partialorder %v1215_v60, 8.507059e+37 }
0x198f   :  { %v1655_v57 = vpop.eup %1654 }
0x1990   :  { %v1207_v58 = vmul.f32 %v1655_v57, %v1205_v56  ;;  %vm1212_vm6 = vweird.f32 %v1655_v57  ;;  %v1657_v14 = vpop.eup %1656 }
0x1991   :  { %vm1213_vm8 = vmor %vm1211_vm7, %vm1212_vm6 }
0x1992   :  { %v1208_v2 = vsub.f32 1.0, %v1207_v58 }
0x1994   :  { %v1209_v3 = vmul.f32 %v1655_v57, %v1208_v2 }
0x1996   :  { %v1210_v9 = vadd.f32 %v1655_v57, %v1209_v3 }
0x1998   :  { %v1214_v62 = vsel %vm1213_vm8, %v1655_v57, %v1210_v9 }
0x1999   :  { %v1219_v0 = vsel %vm1216_vm9, %v1218_v6, %v1214_v62 }
0x199a   :  { %v1222_v4 = vmul.f32 %v1219_v0, %v1168_v43 }
0x19f7   :  { %v1225_v13 = vpop.permute.xlu0 %1224 }
0x19f8   :  { %v1227_v1 = vmul.f32 %v1225_v13, %v1219_v0 }
0x19fa   :  { %1229 = vrot.lane.b32.xlu1 %v1227_v1, %s1797_s16 }
0x1a02   :  { %746 = vrot.lane.b32.xlu1 %v1657_v14, %s1796_s15 }
0x1a6c   :  { %v1230_v7 = vpop.permute.xlu1 %1229 }
0x1a6d   :  { %v2129_v15 = vadd.f32 %v1230_v7, %v1222_v4 }
0x1a6f   :  { %1658 = vtanh.f32 %v2129_v15 }
0x1a70   :  { %1660 = vpow2.f32 %v1513_v16 }
0x1a74   :  { %v747_v29 = vpop.permute.xlu1 %746 }
0x1a75   :  { %v1659_v5 = vpop.eup %1658 }
0x1a76   :  { %1235 = vrot.lane.b32.xlu2 %v1659_v5, %s1796_s15  ;;  %v1661_v59 = vpop.eup %1660 }
0x1a77   :  { %v727_v17 = vadd.f32 1.0, %v1661_v59 }
0x1a79   :  { %1662 = vrcp.f32 %v727_v17  ;;  %v739_v25 = vand.u32 2147483648, %v727_v17  ;;  %vm733_vm11 = vweird.f32 %v727_v17  ;;  %v737_v26 = vand.u32 2147483647, %v727_v17 }
0x1a7b   :  { %v740_v28 = vor.u32 1.1754944e-38, %v739_v25  ;;  %vm738_vm13 = vcmp.eq.f32.partialorder %v737_v26, 8.507059e+37 }
0x1a7f   :  { %v1663_v18 = vpop.eup %1662 }
0x1a80   :  { %v729_v19 = vmul.f32 %v1663_v18, %v727_v17  ;;  %vm734_vm10 = vweird.f32 %v1663_v18 }
0x1a81   :  { %vm735_vm12 = vmor %vm733_vm11, %vm734_vm10 }
0x1a82   :  { %v730_v20 = vsub.f32 1.0, %v729_v19 }
0x1a84   :  { %v731_v21 = vmul.f32 %v1663_v18, %v730_v20 }
0x1a86   :  { %v732_v23 = vadd.f32 %v1663_v18, %v731_v21 }
0x1a88   :  { %v736_v27 = vsel %vm735_vm12, %v1663_v18, %v732_v23 }
0x1a89   :  { %v741_v30 = vsel %vm738_vm13, %v740_v28, %v736_v27  ;;  %v1370_v28 = vld [vmem:[#allocation6 + $0x18] sm:$0xff] }
0x1a8a   :  { %v749_v31 = vmul.f32 %v747_v29, %v741_v30  ;;  %v744_v38 = vmul.f32 %v741_v30, %v2064_v45  ;;  %v1369_v29 = vld [vmem:[#allocation6 + $0x10] sm:$0xff]  ;;  %1392 = vmatpush.msra.mxu1 %v1370_v28 }
0x1a8c   :  { %1393 = vmatpush.msra.mxu1 %v1369_v29 }
0x1ad0   :  { %v1236_v22 = vpop.permute.xlu2 %1235 }
0x1ad1   :  { %v1238_v24 = vmul.f32 %v1236_v22, %v1219_v0 }
0x1ad3   :  { %1241 = vrot.lane.b32.xlu0 %v1238_v24, %s1797_s16 }
0x1adb   :  { %751 = vrot.lane.b32.xlu0 %v749_v31, %s1797_s16  ;;  %v1367_v31 = vld [vmem:[#allocation6] sm:$0xff] }
0x1b45   :  { %v1242_v32 = vpop.permute.xlu0 %1241 }
0x1b46   :  { %1533 = vmatmul.msk.f32.vlgmr.msrb.gmra.mxu1 %vm196_vm5, %v1242_v32 }
0x1b4d   :  { %v752_v37 = vpop.permute.xlu0 %751 }
0x1b4e   :  { %v754_v39 = vadd.f32 %v752_v37, %v744_v38  ;;  %v1404_v37 = vld [vmem:[#allocation8 + $0x8] sm:$0xff]  ;;  %v1403_v38 = vld [vmem:[#allocation8] sm:$0xff] }
0x1bc3   :  { %v1262_v35 = vpop.f32.mrf.mxu1 }
0x1bc4   :  { %v1265_v36 = vadd.f32 %v1262_v35, %v843_v34  ;;  %v1406_v34 = vld [vmem:[#allocation8 + $0x18] sm:$0xff] }
0x1bc5   :  { %1426 = vmatpush.msrb.mxu2 %v1406_v34 }
0x1bc6   :  { %1664 = vtanh.f32 %v1265_v36  ;;  %v1534_v42 = vmul.f32 -1.442695, %v1265_v36  ;;  %v1405_v36 = vld [vmem:[#allocation8 + $0x10] sm:$0xff] }
0x1bc7   :  { %1666 = vtanh.f32 %v754_v39  ;;  %1427 = vmatpush.msrb.mxu2 %v1405_v36  ;;  %v1440_v39 = vld [vmem:[#allocation9 + $0x18] sm:$0xff] }
0x1bc8   :  { %1668 = vpow2.f32 %v1534_v42  ;;  %1456 = vmatpush.msrb.mxu0 %v1440_v39  ;;  %v1437_v42 = vld [vmem:[#allocation9] sm:$0xff] }
0x1bc9   :  { %1428 = vmatpush.msrb.mxu2 %v1404_v37 }
0x1bcb   :  { %1429 = vmatpush.msrb.mxu2 %v1403_v38 }
0x1bcc   :  { %v1665_v40 = vpop.eup %1664 }
0x1bcd   :  { %1288 = vrot.lane.b32.xlu2 %v1665_v40, %s1796_s15  ;;  %v1667_v41 = vpop.eup %1666  ;;  %v1439_v40 = vld [vmem:[#allocation9 + $0x10] sm:$0xff] }
0x1bce   :  { %v1669_v43 = vpop.eup %1668  ;;  %1457 = vmatpush.msrb.mxu0 %v1439_v40 }
0x1bcf   :  { %v1269_v44 = vadd.f32 1.0, %v1669_v43  ;;  %v1552_v43 = vld [vmem:[%s2173_s8] ss:$0 sm:$0xff] }
0x1bd1   :  { %1670 = vrcp.f32 %v1269_v44  ;;  %v1281_v45 = vand.u32 2147483648, %v1269_v44  ;;  %vm1275_vm15 = vweird.f32 %v1269_v44  ;;  %v1279_v51 = vand.u32 2147483647, %v1269_v44 }
0x1bd3   :  { %v1282_v53 = vor.u32 1.1754944e-38, %v1281_v45  ;;  %vm1280_vm2 = vcmp.eq.f32.partialorder %v1279_v51, 8.507059e+37 }
0x1bd5   :  { %757 = vrot.lane.b32.xlu2 %v1667_v41, %s1796_s15  ;;  %v1438_v41 = vld [vmem:[#allocation9 + $0x8] sm:$0xff] }
0x1bd6   :  { %1458 = vmatpush.msrb.mxu0 %v1438_v41 }
0x1bd7   :  { %v1671_v46 = vpop.eup %1670 }
0x1bd8   :  { %v1271_v47 = vmul.f32 %v1671_v46, %v1269_v44  ;;  %vm1276_vm14 = vweird.f32 %v1671_v46  ;;  %1459 = vmatpush.msrb.mxu0 %v1437_v42 }
0x1bd9   :  { %vm1277_vm1 = vmor %vm1275_vm15, %vm1276_vm14 }
0x1bda   :  { %v1272_v48 = vsub.f32 1.0, %v1271_v47 }
0x1bdc   :  { %v1273_v49 = vmul.f32 %v1671_v46, %v1272_v48 }
0x1bde   :  { %v1274_v50 = vadd.f32 %v1671_v46, %v1273_v49  ;;  %v1553_v49 = vld [vmem:[%s2175_s10] ss:$0 sm:$0xff] }
0x1be0   :  { %v1278_v52 = vsel %vm1277_vm1, %v1671_v46, %v1274_v50 }
0x1be1   :  { %v1283_v55 = vsel %vm1280_vm2, %v1282_v53, %v1278_v52 }
0x1be2   :  { %v1286_v2 = vmul.f32 %v1283_v55, %v2129_v15 }
0x1c27   :  { %v1289_v54 = vpop.permute.xlu2 %1288 }
0x1c28   :  { %v1291_v56 = vmul.f32 %v1289_v54, %v1283_v55 }
0x1c2a   :  { %1293 = vrot.lane.b32.xlu1 %v1291_v56, %s1797_s16 }
0x1c2f   :  { %v758_v57 = vpop.permute.xlu2 %757 }
0x1c30   :  { %v760_v58 = vmul.f32 %v758_v57, %v741_v30  ;;  %v1368_v30 = vld [vmem:[#allocation6 + $0x8] sm:$0xff] }
0x1c31   :  { %1394 = vmatpush.msra.mxu1 %v1368_v30 }
0x1c32   :  { %762 = vrot.lane.b32.xlu1 %v760_v58, %s1797_s16 }
0x1c33   :  { %1395 = vmatpush.msra.mxu1 %v1367_v31 }
0x1c9c   :  { %v1294_v3 = vpop.permute.xlu1 %1293 }
0x1c9d   :  { %v1296_v8 = vadd.f32 %v1294_v3, %v1286_v2 }
0x1c9f   :  { %1672 = vtanh.f32 %v1296_v8 }
0x1ca4   :  { %v763_v9 = vpop.permute.xlu1 %762 }
0x1ca5   :  { %v1673_v10 = vpop.eup %1672  ;;  %766 = vst.msk [vmem:[#allocation3 + $0x38] sm:$0xff] %vm196_vm5, %v763_v9 }
0x1ca6   :  { %1299 = vrot.lane.b32.xlu0 %v1673_v10, %s1796_s15 }
0x1cac   :  { %v774_v60 = vld [vmem:[#allocation3 + $0x38] sm:$0xff] }
0x1cad   :  { %1521 = vmatmul.msk.f32.gmra.mxu3 %vm196_vm5, %v774_v60 }
0x1d18   :  { %v1300_v61 = vpop.permute.xlu0 %1299 }
0x1d19   :  { %v1302_v11 = vmul.f32 %v1300_v61, %v1283_v55 }
0x1d1b   :  { %1305 = vrot.lane.b32.xlu2 %v1302_v11, %s1797_s16 }
0x1d30   :  { %v845_v6 = vpop.f32.mrf.mxu3 }
0x1d31   :  { %v846_v63 = vadd.f32 %v2056_v12, %v845_v6 }
0x1d75   :  { %v1306_v62 = vpop.permute.xlu2 %1305 }
0x1d76   :  { %1535 = vmatmul.msk.f32.vlgmr.msra.gmra.mxu2 %vm196_vm5, %v1306_v62 }
0x1df9   :  { %v1326_v13 = vpop.f32.mrf.mxu2 }
0x1dfa   :  { %v1329_v0 = vadd.f32 %v1326_v13, %v846_v63 }
0x1dfc   :  { %1674 = vtanh.f32 %v1329_v0  ;;  %v1536_v14 = vmul.f32 -1.442695, %v1329_v0 }
0x1dfe   :  { %1676 = vpow2.f32 %v1536_v14 }
0x1e02   :  { %v1675_v1 = vpop.eup %1674 }
0x1e03   :  { %1352 = vrot.lane.b32.xlu0 %v1675_v1, %s1796_s15 }
0x1e04   :  { %v1677_v4 = vpop.eup %1676 }
0x1e05   :  { %v1333_v7 = vadd.f32 1.0, %v1677_v4 }
0x1e07   :  { %1678 = vrcp.f32 %v1333_v7  ;;  %v1345_v18 = vand.u32 2147483648, %v1333_v7  ;;  %vm1339_vm4 = vweird.f32 %v1333_v7  ;;  %v1343_v12 = vand.u32 2147483647, %v1333_v7 }
0x1e09   :  { %v1346_v20 = vor.u32 1.1754944e-38, %v1345_v18  ;;  %vm1344_vm6 = vcmp.eq.f32.partialorder %v1343_v12, 8.507059e+37 }
0x1e0d   :  { %v1679_v15 = vpop.eup %1678 }
0x1e0e   :  { %v1335_v5 = vmul.f32 %v1679_v15, %v1333_v7  ;;  %vm1340_vm3 = vweird.f32 %v1679_v15 }
0x1e0f   :  { %vm1341_vm0 = vmor %vm1339_vm4, %vm1340_vm3 }
0x1e10   :  { %v1336_v16 = vsub.f32 1.0, %v1335_v5 }
0x1e12   :  { %v1337_v59 = vmul.f32 %v1679_v15, %v1336_v16 }
0x1e14   :  { %v1338_v17 = vadd.f32 %v1679_v15, %v1337_v59 }
0x1e16   :  { %v1342_v19 = vsel %vm1341_vm0, %v1679_v15, %v1338_v17 }
0x1e17   :  { %v1347_v22 = vsel %vm1344_vm6, %v1346_v20, %v1342_v19 }
0x1e18   :  { %v1350_v24 = vmul.f32 %v1347_v22, %v1296_v8 }
0x1e75   :  { %v1353_v21 = vpop.permute.xlu0 %1352 }
0x1e76   :  { %v1355_v23 = vmul.f32 %v1353_v21, %v1347_v22 }
0x1e78   :  { %1357 = vrot.lane.b32.xlu1 %v1355_v23, %s1797_s16 }
0x1eea   :  { %v1358_v25 = vpop.permute.xlu1 %1357 }
0x1eeb   :  { %v1360_v26 = vadd.f32 %v1358_v25, %v1350_v24 }
0x1eed   :  { %1680 = vtanh.f32 %v1360_v26 }
0x1ef3   :  { %v1681_v27 = vpop.eup %1680 }
0x1ef4   :  { %1363 = vrot.lane.b32.xlu2 %v1681_v27, %s1796_s15 }
0x1f4e   :  { %v1364_v32 = vpop.permute.xlu2 %1363 }
0x1f4f   :  { %v1366_v33 = vmul.f32 %v1364_v32, %v1347_v22 }
0x1f51   :  { %1376 = vrot.lane.b32.xlu0 %v1366_v33, %s1797_s16 }
0x1fc3   :  { %v1377_v35 = vpop.permute.xlu0 %1376 }
0x1fc4   :  { %1537 = vmatmul.msk.f32.vlgmr.msra.gmra.mxu1 %vm196_vm5, %v1377_v35 }
0x2041   :  { %v1397_v44 = vpop.f32.mrf.mxu1 }
0x2042   :  { %v1398_v46 = vadd.f32 %v1552_v43, %v1397_v44 }
0x2044   :  { %vm1400_vm7 = vcmp.gt.f32.partialorder %v1398_v46, 0.0  ;;  %v1401_v47 = vmul.f32 0.01, %v1398_v46 }
0x2046   :  { %v1402_v48 = vsel %vm1400_vm7, %v1398_v46, %v1401_v47 }
0x2047   :  { %1538 = vmatmul.msk.f32.vlgmr.msrb.gmra.mxu2 %vm196_vm5, %v1402_v48 }
0x20ca   :  { %v1431_v50 = vpop.f32.mrf.mxu2 }
0x20cb   :  { %v1432_v45 = vadd.f32 %v1553_v49, %v1431_v50 }
0x20cd   :  { %vm1434_vm8 = vcmp.gt.f32.partialorder %v1432_v45, 0.0  ;;  %v1435_v51 = vmul.f32 0.01, %v1432_v45 }
0x20cf   :  { %v1436_v52 = vsel %vm1434_vm8, %v1432_v45, %v1435_v51 }
0x20d0   :  { %1539 = vmatmul.msk.f32.vlgmr.msrb.gmra.mxu0 %vm196_vm5, %v1436_v52 }
0x214d   :  { %v1461_v53 = vpop.f32.mrf.mxu0 }
0x214e   :  { %v1540_v54 = vmul.f32 -1.442695, %v1461_v53 }
0x2150   :  { %1682 = vpow2.f32 %v1540_v54 }
0x2156   :  { %v1683_v55 = vpop.eup %1682 }
0x2157   :  { %v1467_v56 = vadd.f32 1.0, %v1683_v55 }
0x2159   :  { %1684 = vrcp.f32 %v1467_v56  ;;  %v1479_v3 = vand.u32 2147483648, %v1467_v56  ;;  %v1477_v9 = vand.u32 2147483647, %v1467_v56  ;;  %vm1473_vm10 = vweird.f32 %v1467_v56 }
0x215b   :  { %v1480_v60 = vor.u32 1.1754944e-38, %v1479_v3  ;;  %vm1478_vm12 = vcmp.eq.f32.partialorder %v1477_v9, 8.507059e+37 }
0x215f   :  { %v1685_v57 = vpop.eup %1684 }
0x2160   :  { %v1469_v58 = vmul.f32 %v1685_v57, %v1467_v56  ;;  %vm1474_vm9 = vweird.f32 %v1685_v57 }
0x2161   :  { %vm1475_vm11 = vmor %vm1473_vm10, %vm1474_vm9 }
0x2162   :  { %v1470_v2 = vsub.f32 1.0, %v1469_v58 }
0x2164   :  { %v1471_v8 = vmul.f32 %v1685_v57, %v1470_v2 }
0x2166   :  { %v1472_v10 = vadd.f32 %v1685_v57, %v1471_v8 }
0x2168   :  { %v1476_v61 = vsel %vm1475_vm11, %v1685_v57, %v1472_v10 }
0x2169   :  { %v1481_v11 = vsel %vm1478_vm12, %v1480_v60, %v1476_v61 }
0x216a   :  { %1483 = vst [vmem:[%s2177_s12] sm:$0xff] %v1481_v11 }
0x216b   :  { %1488 = vsyncpa [#allocation5], 1 }
0x216c   :  { %1489 = vsyncpa [#allocation7], 1 }
0x216d   :  { %1490 = vsyncpa [#allocation10], 1 }

</bundles_post_ra>
